<compile_context>
chip_gen: v5e
topology: v5e:2x2
jax: 0.10.0
libtpu: 0.0.40
codegen_flags: <defaults>
</compile_context>

<pallas_src>
import functools
import math

import jax
import jax.numpy as jnp
from jax.experimental import pallas as pl
from jax.experimental.pallas import tpu as pltpu


# ----------------------------- small helpers -------------------------------

def _round_up(x, m):
    return ((x + m - 1) // m) * m


def _layernorm(x, gamma, beta, eps):
    # PyTorch nn.LayerNorm: biased variance over the last axis (f32).
    mu = jnp.mean(x, axis=-1, keepdims=True)
    xc = x - mu
    var = jnp.mean(xc * xc, axis=-1, keepdims=True)
    inv = jax.lax.rsqrt(var + eps)
    return xc * inv * gamma + beta


def _gelu_tanh(x):
    # gelu_pytorch_tanh (SigLip MLP activation)
    c = math.sqrt(2.0 / math.pi)
    return 0.5 * x * (1.0 + jnp.tanh(c * (x + 0.044715 * x * x * x)))


def _vmem_limit_bytes():
    # Generation-aware VMEM budget: ~3/4 of physical capacity, capped at 100MiB.
    cap = 64 * 1024 * 1024          # conservative default (v7x physical VMEM)
    try:
        info = pltpu.get_tpu_info()
        cap = int(getattr(info, "vmem_capacity_bytes", cap))
    except Exception:
        pass
    return int(min(100 * 1024 * 1024, (cap * 3) // 4))


def _seq_tiling(n, vmem_limit):
    # Works for non-power-of-two N (e.g. SigLip N=729 -> tile 128/256, Np=768).
    preferred = 256 if vmem_limit >= 80 * 1024 * 1024 else 128
    tile = preferred if n >= preferred else _round_up(n, 8)
    return tile, _round_up(n, tile)


@functools.lru_cache(maxsize=None)
def _single_buffer_mode():
    """Return pl.Buffered(1) if supported by this jax/Mosaic, else None."""
    try:
        mode = pl.Buffered(1)
        w_spec = pl.BlockSpec((8, 128), lambda i: (0, 0), pipeline_mode=mode)

        def _probe(w_ref, x_ref, o_ref):
            o_ref[...] = x_ref[...] + w_ref[...]

        fn = pl.pallas_call(
            _probe,
            out_shape=jax.ShapeDtypeStruct((16, 128), jnp.float32),
            grid=(2,),
            in_specs=[w_spec, pl.BlockSpec((8, 128), lambda i: (i, 0))],
            out_specs=pl.BlockSpec((8, 128), lambda i: (i, 0)),
        )
        jax.block_until_ready(fn(jnp.zeros((8, 128), jnp.float32),
                                 jnp.zeros((16, 128), jnp.float32)))
        return mode
    except Exception:
        return None


def _const_spec(shape, single_buffer=False):
    """BlockSpec for an operand whose block index is constant over the grid."""
    nd = len(shape)
    idx = lambda *_: (0,) * nd
    mode = _single_buffer_mode() if single_buffer else None
    if mode is not None:
        return pl.BlockSpec(shape, idx, pipeline_mode=mode)
    return pl.BlockSpec(shape, idx)


# ------------------------------- kernels -----------------------------------

def embed_kernel(patches_ref, w_ref, b_ref, pos_ref, o_ref):
    # patches: (1, tn, K) bf16   w: (K, D) bf16   b: (1, D) f32   pos: (tn, D) f32
    y = jnp.dot(patches_ref[0], w_ref[...], preferred_element_type=jnp.float32)
    o_ref[0] = (y + b_ref[...] + pos_ref[...]).astype(o_ref.dtype)


def qkv_kernel(x_ref, g_ref, b_ref, w_ref, bias_ref, o_ref, *, eps):
    # x: (1, tn, D) bf16   w: (D, 3D) bf16   bias: (1, 3D) f32 (q part prescaled)
    xf = x_ref[0].astype(jnp.float32)
    h = _layernorm(xf, g_ref[...], b_ref[...], eps)
    y = jnp.dot(h.astype(jnp.bfloat16), w_ref[...],
                preferred_element_type=jnp.float32) + bias_ref[...]
    o_ref[0] = y.astype(o_ref.dtype)


def attn_core_kernel(q_ref, k_ref, v_ref, o_ref, *, kv_len):
    # q: (1, H, tq, dh) bf16 (already scaled)   k, v: (1, H, Np, dh) bf16
    q = q_ref[0]
    k = k_ref[0]
    v = v_ref[0]
    s = jnp.einsum('hqe,hke->hqk', q, k,
                   preferred_element_type=jnp.float32)        # (H, tq, Np) f32
    if kv_len is not None:  # static: only when the sequence was padded
        kv_idx = jax.lax.broadcasted_iota(jnp.int32, s.shape, 2)
        s = jnp.where(kv_idx < kv_len, s, -1e30)
    s = s - jnp.max(s, axis=-1, keepdims=True)
    p = jnp.exp(s)
    p = p * pl.reciprocal(jnp.sum(p, axis=-1, keepdims=True), approx=True)
    ctx = jnp.einsum('hqk,hke->hqe', p.astype(jnp.bfloat16), v,
                     preferred_element_type=jnp.float32)      # (H, tq, dh)
    o_ref[0] = ctx.astype(o_ref.dtype)


def proj_mlp_kernel(ctx_ref, x_ref, wo_ref, bo_ref, g_ref, b_ref,
                    w1_ref, b1_ref, w2_ref, b2_ref, o_ref, *, eps):
    # ctx: (1, tn, D) bf16 (heads flattened)  x: (1, tn, D) bf16 residual stream
    attn = jnp.dot(ctx_ref[0], wo_ref[...],
                   preferred_element_type=jnp.float32) + bo_ref[...]
    h1 = x_ref[0].astype(jnp.float32) + attn                  # residual 1
    h = _layernorm(h1, g_ref[...], b_ref[...], eps)
    m = jnp.dot(h.astype(jnp.bfloat16), w1_ref[...],
                preferred_element_type=jnp.float32) + b1_ref[...]
    m = _gelu_tanh(m)
    m = jnp.dot(m.astype(jnp.bfloat16), w2_ref[...],
                preferred_element_type=jnp.float32) + b2_ref[...]
    o_ref[0] = (h1 + m).astype(o_ref.dtype)                   # residual 2


def post_ln_kernel(x_ref, g_ref, b_ref, o_ref, *, eps):
    o_ref[0] = _layernorm(x_ref[0].astype(jnp.float32),
                          g_ref[...], b_ref[...], eps).astype(o_ref.dtype)


# ------------------------------- wrapper ------------------------------------

def _prepare_params(params, config):
    """Cast matmul weights to bf16, fuse QKV weights, fold in the q scale."""
    D = config["hidden_size"]
    nH = config["num_attention_heads"]
    dh = D // nH
    scale = dh ** -0.5

    def f32(a):
        return a.astype(jnp.float32)

    def bf16(a):
        return a.astype(jnp.bfloat16)

    pp = {
        "patch_w": bf16(params["patch_w"]),
        "patch_b": f32(params["patch_b"]),
        "pos_emb": f32(params["pos_emb"]),
        "post_ln_g": f32(params["post_ln_g"]),
        "post_ln_b": f32(params["post_ln_b"]),
        "layers": [],
    }
    for lp in params["layers"]:
        wqkv = jnp.concatenate([lp["wq"] * scale, lp["wk"], lp["wv"]], axis=1)
        bqkv = jnp.concatenate([lp["bq"] * scale, lp["bk"], lp["bv"]], axis=1)
        pp["layers"].append({
            "ln1_g": f32(lp["ln1_g"]), "ln1_b": f32(lp["ln1_b"]),
            "wqkv": bf16(wqkv), "bqkv": f32(bqkv),
            "wo": bf16(lp["wo"]), "bo": f32(lp["bo"]),
            "ln2_g": f32(lp["ln2_g"]), "ln2_b": f32(lp["ln2_b"]),
            "w1": bf16(lp["w1"]), "b1": f32(lp["b1"]),
            "w2": bf16(lp["w2"]), "b2": f32(lp["b2"]),
        })
    return pp


def siglip_vision_forward(pixel_values, params, config):
    B, C, H, W = pixel_values.shape
    P = config["patch_size"]
    D = config["hidden_size"]
    I = config["intermediate_size"]
    nH = config["num_attention_heads"]
    eps = config["layer_norm_eps"]
    dh = D // nH
    N = (H // P) * (W // P)
    K = C * P * P

    vmem_limit = _vmem_limit_bytes()
    tn, Np = _seq_tiling(N, vmem_limit)

    pp = _prepare_params(params, config)

    # Non-overlapping patches == Conv2d(stride=P).flatten(2).transpose(1,2).
    # TODO(synk): when loading real Conv2d checkpoints (weight (D,C,P,P)), the
    #             flatten order of patch_w must match this (c, ph, pw) order.
    patches = pixel_values.reshape(B, C, H // P, P, W // P, P)
    patches = patches.transpose(0, 2, 4, 1, 3, 5).reshape(B, N, K)
    patches = patches.astype(jnp.bfloat16)
    pos = pp["pos_emb"]
    if Np != N:
        patches = jnp.pad(patches, ((0, 0), (0, Np - N), (0, 0)))
        pos = jnp.pad(pos, ((0, Np - N), (0, 0)))

    cparams = pltpu.CompilerParams(
        dimension_semantics=("parallel", "parallel"),
        vmem_limit_bytes=vmem_limit)

    seq_grid = (B, Np // tn)
    x_spec = pl.BlockSpec((1, tn, D), lambda b, s: (b, s, 0))

    # 1) patch embedding + positional embedding (sequence-tiled)
    x = pl.pallas_call(
        embed_kernel,
        out_shape=jax.ShapeDtypeStruct((B, Np, D), jnp.bfloat16),
        grid=seq_grid,
        in_specs=[pl.BlockSpec((1, tn, K), lambda b, s: (b, s, 0)),
                  _const_spec((K, D), single_buffer=True),
                  _const_spec((1, D)),
                  pl.BlockSpec((tn, D), lambda b, s: (s, 0))],
        out_specs=x_spec,
        compiler_params=cparams,
    )(patches, pp["patch_w"], pp["patch_b"], pos)

    # 2) per-layer pallas_calls
    qkv_call = pl.pallas_call(
        functools.partial(qkv_kernel, eps=eps),
        out_shape=jax.ShapeDtypeStruct((B, Np, 3 * D), jnp.bfloat16),
        grid=seq_grid,
        in_specs=[x_spec,
                  _const_spec((1, D)), _const_spec((1, D)),        # ln1
                  _const_spec((D, 3 * D), single_buffer=True),     # fused qkv
                  _const_spec((1, 3 * D))],
        out_specs=pl.BlockSpec((1, tn, 3 * D), lambda b, s: (b, s, 0)),
        compiler_params=cparams,
    )

    kv_len = N if Np != N else None
    attn_call = pl.pallas_call(
        functools.partial(attn_core_kernel, kv_len=kv_len),
        out_shape=jax.ShapeDtypeStruct((B, nH, Np, dh), jnp.bfloat16),
        grid=seq_grid,
        in_specs=[pl.BlockSpec((1, nH, tn, dh), lambda b, s: (b, 0, s, 0)),
                  pl.BlockSpec((1, nH, Np, dh), lambda b, s: (b, 0, 0, 0)),
                  pl.BlockSpec((1, nH, Np, dh), lambda b, s: (b, 0, 0, 0))],
        out_specs=pl.BlockSpec((1, nH, tn, dh), lambda b, s: (b, 0, s, 0)),
        compiler_params=cparams,
    )

    proj_mlp_call = pl.pallas_call(
        functools.partial(proj_mlp_kernel, eps=eps),
        out_shape=jax.ShapeDtypeStruct((B, Np, D), jnp.bfloat16),
        grid=seq_grid,
        in_specs=[x_spec,                                           # ctx (flat)
                  x_spec,                                           # residual x
                  _const_spec((D, D), single_buffer=True), _const_spec((1, D)),
                  _const_spec((1, D)), _const_spec((1, D)),         # ln2
                  _const_spec((D, I), single_buffer=True), _const_spec((1, I)),
                  _const_spec((I, D), single_buffer=True), _const_spec((1, D))],
        out_specs=x_spec,
        input_output_aliases={1: 0},                                # x -> out
        compiler_params=cparams,
    )

    for lp in pp["layers"]:
        qkv = qkv_call(x, lp["ln1_g"], lp["ln1_b"], lp["wqkv"], lp["bqkv"])
        # head split done as XLA ops between kernels (no in-kernel relayout)
        qkv_h = qkv.reshape(B, Np, 3, nH, dh).transpose(2, 0, 3, 1, 4)
        ctx = attn_call(qkv_h[0], qkv_h[1], qkv_h[2])
        ctx_flat = ctx.transpose(0, 2, 1, 3).reshape(B, Np, D)
        x = proj_mlp_call(ctx_flat, x, lp["wo"], lp["bo"],
                          lp["ln2_g"], lp["ln2_b"],
                          lp["w1"], lp["b1"], lp["w2"], lp["b2"])

    # 3) post layernorm (sequence-tiled), f32 output
    out = pl.pallas_call(
        functools.partial(post_ln_kernel, eps=eps),
        out_shape=jax.ShapeDtypeStruct((B, Np, D), jnp.float32),
        grid=seq_grid,
        in_specs=[x_spec, _const_spec((1, D)), _const_spec((1, D))],
        out_specs=pl.BlockSpec((1, tn, D), lambda b, s: (b, s, 0)),
        compiler_params=cparams,
    )(x, pp["post_ln_g"], pp["post_ln_b"])

    if Np != N:
        out = out[:, :N, :]
    return out


# --------------------------- parameter init ---------------------------------

def init_params(key, config):
    D = config["hidden_size"]
    I = config["intermediate_size"]
    C = config["num_channels"]
    P = config["patch_size"]
    L = config["num_hidden_layers"]
    N = (config["image_size"] // P) ** 2
    K = C * P * P

    keys = iter(jax.random.split(key, 8 + 16 * L))

    def nrm(shape, scale=0.02):
        return scale * jax.random.normal(next(keys), shape, dtype=jnp.float32)

    params = {
        "patch_w": nrm((K, D)),     # Conv2d weight (D,C,P,P) flattened + T
        "patch_b": nrm((1, D)),
        "pos_emb": nrm((N, D)),
        "post_ln_g": jnp.ones((1, D), jnp.float32),
        "post_ln_b": jnp.zeros((1, D), jnp.float32),
        "layers": [],
    }
    for _ in range(L):
        params["layers"].append({
            "ln1_g": jnp.ones((1, D), jnp.float32),
            "ln1_b": jnp.zeros((1, D), jnp.float32),
            "wq": nrm((D, D)), "bq": nrm((1, D)),
            "wk": nrm((D, D)), "bk": nrm((1, D)),
            "wv": nrm((D, D)), "bv": nrm((1, D)),
            "wo": nrm((D, D)), "bo": nrm((1, D)),
            "ln2_g": jnp.ones((1, D), jnp.float32),
            "ln2_b": jnp.zeros((1, D), jnp.float32),
            "w1": nrm((D, I)), "b1": nrm((1, I)),
            "w2": nrm((I, D)), "b2": nrm((1, D)),
        })
    return params


# --------------------------------- main --------------------------------------

if __name__ == "__main__":
    config = dict(
        hidden_size=32,
        intermediate_size=64,
        num_hidden_layers=2,
        num_attention_heads=4,
        num_channels=3,
        image_size=16,
        patch_size=4,
        layer_norm_eps=1e-6,
    )

    key = jax.random.PRNGKey(0)
    k_params, k_pix = jax.random.split(key)
    params = init_params(k_params, config)

    # NCHW, matching the PyTorch module's input convention.
    pixel_values = jax.random.normal(
        k_pix, (2, config["num_channels"], config["image_size"],
                config["image_size"]), dtype=jnp.float32)

    forward = jax.jit(functools.partial(siglip_vision_forward, config=config))
    out = forward(pixel_values, params)
    out = jax.block_until_ready(out)

    expected_n = (config["image_size"] // config["patch_size"]) ** 2
    assert out.shape == (2, expected_n, config["hidden_size"]), out.shape
    assert jnp.all(jnp.isfinite(out))
    print("KERNEL_OK")
</pallas_src>

<mosaic_0001>
module attributes {stable_mosaic.version = 11 : i64} {
  func.func @embed_kernel(%arg0: i32, %arg1: i32, %arg2: memref<1x16x48xbf16, #tpu.memory_space<vmem>>, %arg3: memref<48x32xbf16, #tpu.memory_space<vmem>>, %arg4: memref<1x32xf32, #tpu.memory_space<vmem>>, %arg5: memref<16x32xf32, #tpu.memory_space<vmem>>, %arg6: memref<1x16x32xbf16, #tpu.memory_space<vmem>>) attributes {dimension_semantics = [#tpu.dimension_semantics<parallel>, #tpu.dimension_semantics<parallel>], iteration_bounds = array<i64: 2, 1>, scalar_prefetch = 0 : i64, scratch_operands = 0 : i64, tpu.core_type = #tpu.core_type<tc>, window_params = [{transform_indices = @transform_0, window_bounds = array<i64: 1, 16, 48>}, {pipeline_mode = #tpu.pipeline_mode<synchronous>, transform_indices = @transform_1, window_bounds = array<i64: 48, 32>}, {pipeline_mode = #tpu.pipeline_mode<synchronous>, transform_indices = @transform_2, window_bounds = array<i64: 1, 32>}, {transform_indices = @transform_3, window_bounds = array<i64: 16, 32>}, {transform_indices = @transform_4, window_bounds = array<i64: 1, 16, 32>}]} {
    %c0 = arith.constant 0 : index
    %c0_0 = arith.constant 0 : index
    %c0_1 = arith.constant 0 : index
    %0 = vector.load %arg2[%c0, %c0_0, %c0_1] : memref<1x16x48xbf16, #tpu.memory_space<vmem>>, vector<1x16x48xbf16>
    %1 = vector.shape_cast %0 : vector<1x16x48xbf16> to vector<16x48xbf16>
    %c0_2 = arith.constant 0 : index
    %c0_3 = arith.constant 0 : index
    %2 = vector.load %arg3[%c0_2, %c0_3] : memref<48x32xbf16, #tpu.memory_space<vmem>>, vector<48x32xbf16>
    %cst = arith.constant dense<0.000000e+00> : vector<16x32xf32>
    %3 = tpu.matmul %1, %2, %cst {dimension_numbers = #tpu.dot_dimension_numbers<[1], [0], [0], [1], [0, 0, 1, 1], [], []>} : vector<16x48xbf16>, vector<48x32xbf16>, vector<16x32xf32> -> vector<16x32xf32>
    %c0_4 = arith.constant 0 : index
    %c0_5 = arith.constant 0 : index
    %4 = vector.load %arg4[%c0_4, %c0_5] : memref<1x32xf32, #tpu.memory_space<vmem>>, vector<1x32xf32>
    %5 = vector.broadcast %4 : vector<1x32xf32> to vector<16x32xf32>
    %6 = arith.addf %3, %5 : vector<16x32xf32>
    %c0_6 = arith.constant 0 : index
    %c0_7 = arith.constant 0 : index
    %7 = vector.load %arg5[%c0_6, %c0_7] : memref<16x32xf32, #tpu.memory_space<vmem>>, vector<16x32xf32>
    %8 = arith.addf %6, %7 : vector<16x32xf32>
    %9 = arith.truncf %8 : vector<16x32xf32> to vector<16x32xbf16>
    %c0_8 = arith.constant 0 : index
    %c0_9 = arith.constant 0 : index
    %c0_10 = arith.constant 0 : index
    %10 = vector.load %arg6[%c0_8, %c0_9, %c0_10] : memref<1x16x32xbf16, #tpu.memory_space<vmem>>, vector<1x16x32xbf16>
    %11 = vector.shape_cast %10 : vector<1x16x32xbf16> to vector<16x32xbf16>
    %12 = vector.shape_cast %9 : vector<16x32xbf16> to vector<1x16x32xbf16>
    tpu.vector_store %arg6[%c0_8, %c0_9, %c0_10], %12 {strides = array<i32>} : memref<1x16x32xbf16, #tpu.memory_space<vmem>>, vector<1x16x32xbf16>,
    return
  }
  func.func @transform_0(%arg0: i32, %arg1: i32) -> (i32, i32, i32) {
    %c0_i32 = arith.constant 0 : i32
    %c0_i32_0 = arith.constant 0 : i32
    return %arg0, %arg1, %c0_i32 : i32, i32, i32
  }
  func.func @transform_1(%arg0: i32, %arg1: i32) -> (i32, i32) {
    %c0_i32 = arith.constant 0 : i32
    %c0_i32_0 = arith.constant 0 : i32
    %c0_i32_1 = arith.constant 0 : i32
    return %c0_i32, %c0_i32_0 : i32, i32
  }
  func.func @transform_2(%arg0: i32, %arg1: i32) -> (i32, i32) {
    %c0_i32 = arith.constant 0 : i32
    %c0_i32_0 = arith.constant 0 : i32
    %c0_i32_1 = arith.constant 0 : i32
    return %c0_i32, %c0_i32_0 : i32, i32
  }
  func.func @transform_3(%arg0: i32, %arg1: i32) -> (i32, i32) {
    %c0_i32 = arith.constant 0 : i32
    %c0_i32_0 = arith.constant 0 : i32
    return %arg1, %c0_i32 : i32, i32
  }
  func.func @transform_4(%arg0: i32, %arg1: i32) -> (i32, i32, i32) {
    %c0_i32 = arith.constant 0 : i32
    %c0_i32_0 = arith.constant 0 : i32
    return %arg0, %arg1, %c0_i32 : i32, i32, i32
  }
}

module attributes {stable_mosaic.version = 11 : i64} {
  func.func @qkv_kernel(%arg0: i32, %arg1: i32, %arg2: memref<1x16x32xbf16, #tpu.memory_space<vmem>>, %arg3: memref<1x32xf32, #tpu.memory_space<vmem>>, %arg4: memref<1x32xf32, #tpu.memory_space<vmem>>, %arg5: memref<32x96xbf16, #tpu.memory_space<vmem>>, %arg6: memref<1x96xf32, #tpu.memory_space<vmem>>, %arg7: memref<1x16x96xbf16, #tpu.memory_space<vmem>>) attributes {dimension_semantics = [#tpu.dimension_semantics<parallel>, #tpu.dimension_semantics<parallel>], iteration_bounds = array<i64: 2, 1>, scalar_prefetch = 0 : i64, scratch_operands = 0 : i64, tpu.core_type = #tpu.core_type<tc>, window_params = [{transform_indices = @transform_0, window_bounds = array<i64: 1, 16, 32>}, {pipeline_mode = #tpu.pipeline_mode<synchronous>, transform_indices = @transform_1, window_bounds = array<i64: 1, 32>}, {pipeline_mode = #tpu.pipeline_mode<synchronous>, transform_indices = @transform_2, window_bounds = array<i64: 1, 32>}, {pipeline_mode = #tpu.pipeline_mode<synchronous>, transform_indices = @transform_3, window_bounds = array<i64: 32, 96>}, {pipeline_mode = #tpu.pipeline_mode<synchronous>, transform_indices = @transform_4, window_bounds = array<i64: 1, 96>}, {transform_indices = @transform_5, window_bounds = array<i64: 1, 16, 96>}]} {
    %c0 = arith.constant 0 : index
    %c0_0 = arith.constant 0 : index
    %c0_1 = arith.constant 0 : index
    %0 = vector.load %arg2[%c0, %c0_0, %c0_1] : memref<1x16x32xbf16, #tpu.memory_space<vmem>>, vector<1x16x32xbf16>
    %1 = vector.shape_cast %0 : vector<1x16x32xbf16> to vector<16x32xbf16>
    %2 = arith.extf %1 : vector<16x32xbf16> to vector<16x32xf32>
    %c0_2 = arith.constant 0 : index
    %c0_3 = arith.constant 0 : index
    %3 = vector.load %arg3[%c0_2, %c0_3] : memref<1x32xf32, #tpu.memory_space<vmem>>, vector<1x32xf32>
    %c0_4 = arith.constant 0 : index
    %c0_5 = arith.constant 0 : index
    %4 = vector.load %arg4[%c0_4, %c0_5] : memref<1x32xf32, #tpu.memory_space<vmem>>, vector<1x32xf32>
    %cst = arith.constant dense<0.000000e+00> : vector<16xf32>
    %5 = vector.multi_reduction <add>, %2, %cst [1] : vector<16x32xf32> to vector<16xf32>
    %6 = vector.shape_cast %5 : vector<16xf32> to vector<16x1xf32>
    %cst_6 = arith.constant 3.200000e+01 : f32
    %7 = vector.broadcast %cst_6 : f32 to vector<16x1xf32>
    %8 = arith.divf %6, %7 : vector<16x1xf32>
    %9 = vector.broadcast %8 : vector<16x1xf32> to vector<16x32xf32>
    %10 = arith.subf %2, %9 : vector<16x32xf32>
    %11 = arith.mulf %10, %10 : vector<16x32xf32>
    %cst_7 = arith.constant dense<0.000000e+00> : vector<16xf32>
    %12 = vector.multi_reduction <add>, %11, %cst_7 [1] : vector<16x32xf32> to vector<16xf32>
    %13 = vector.shape_cast %12 : vector<16xf32> to vector<16x1xf32>
    %cst_8 = arith.constant 3.200000e+01 : f32
    %14 = vector.broadcast %cst_8 : f32 to vector<16x1xf32>
    %15 = arith.divf %13, %14 : vector<16x1xf32>
    %cst_9 = arith.constant 9.99999997E-7 : f32
    %16 = vector.broadcast %cst_9 : f32 to vector<16x1xf32>
    %17 = arith.addf %15, %16 : vector<16x1xf32>
    %18 = math.rsqrt %17 : vector<16x1xf32>
    %19 = vector.broadcast %18 : vector<16x1xf32> to vector<16x32xf32>
    %20 = arith.mulf %10, %19 : vector<16x32xf32>
    %21 = vector.broadcast %3 : vector<1x32xf32> to vector<16x32xf32>
    %22 = arith.mulf %20, %21 : vector<16x32xf32>
    %23 = vector.broadcast %4 : vector<1x32xf32> to vector<16x32xf32>
    %24 = arith.addf %22, %23 : vector<16x32xf32>
    %25 = arith.truncf %24 : vector<16x32xf32> to vector<16x32xbf16>
    %c0_10 = arith.constant 0 : index
    %c0_11 = arith.constant 0 : index
    %26 = vector.load %arg5[%c0_10, %c0_11] : memref<32x96xbf16, #tpu.memory_space<vmem>>, vector<32x96xbf16>
    %cst_12 = arith.constant dense<0.000000e+00> : vector<16x96xf32>
    %27 = tpu.matmul %25, %26, %cst_12 {dimension_numbers = #tpu.dot_dimension_numbers<[1], [0], [0], [1], [0, 0, 1, 1], [], []>} : vector<16x32xbf16>, vector<32x96xbf16>, vector<16x96xf32> -> vector<16x96xf32>
    %c0_13 = arith.constant 0 : index
    %c0_14 = arith.constant 0 : index
    %28 = vector.load %arg6[%c0_13, %c0_14] : memref<1x96xf32, #tpu.memory_space<vmem>>, vector<1x96xf32>
    %29 = vector.broadcast %28 : vector<1x96xf32> to vector<16x96xf32>
    %30 = arith.addf %27, %29 : vector<16x96xf32>
    %31 = arith.truncf %30 : vector<16x96xf32> to vector<16x96xbf16>
    %c0_15 = arith.constant 0 : index
    %c0_16 = arith.constant 0 : index
    %c0_17 = arith.constant 0 : index
    %32 = vector.load %arg7[%c0_15, %c0_16, %c0_17] : memref<1x16x96xbf16, #tpu.memory_space<vmem>>, vector<1x16x96xbf16>
    %33 = vector.shape_cast %32 : vector<1x16x96xbf16> to vector<16x96xbf16>
    %34 = vector.shape_cast %31 : vector<16x96xbf16> to vector<1x16x96xbf16>
    tpu.vector_store %arg7[%c0_15, %c0_16, %c0_17], %34 {strides = array<i32>} : memref<1x16x96xbf16, #tpu.memory_space<vmem>>, vector<1x16x96xbf16>,
    return
  }
  func.func @transform_0(%arg0: i32, %arg1: i32) -> (i32, i32, i32) {
    %c0_i32 = arith.constant 0 : i32
    %c0_i32_0 = arith.constant 0 : i32
    return %arg0, %arg1, %c0_i32 : i32, i32, i32
  }
  func.func @transform_1(%arg0: i32, %arg1: i32) -> (i32, i32) {
    %c0_i32 = arith.constant 0 : i32
    %c0_i32_0 = arith.constant 0 : i32
    %c0_i32_1 = arith.constant 0 : i32
    return %c0_i32, %c0_i32_0 : i32, i32
  }
  func.func @transform_2(%arg0: i32, %arg1: i32) -> (i32, i32) {
    %c0_i32 = arith.constant 0 : i32
    %c0_i32_0 = arith.constant 0 : i32
    %c0_i32_1 = arith.constant 0 : i32
    return %c0_i32, %c0_i32_0 : i32, i32
  }
  func.func @transform_3(%arg0: i32, %arg1: i32) -> (i32, i32) {
    %c0_i32 = arith.constant 0 : i32
    %c0_i32_0 = arith.constant 0 : i32
    %c0_i32_1 = arith.constant 0 : i32
    return %c0_i32, %c0_i32_0 : i32, i32
  }
  func.func @transform_4(%arg0: i32, %arg1: i32) -> (i32, i32) {
    %c0_i32 = arith.constant 0 : i32
    %c0_i32_0 = arith.constant 0 : i32
    %c0_i32_1 = arith.constant 0 : i32
    return %c0_i32, %c0_i32_0 : i32, i32
  }
  func.func @transform_5(%arg0: i32, %arg1: i32) -> (i32, i32, i32) {
    %c0_i32 = arith.constant 0 : i32
    %c0_i32_0 = arith.constant 0 : i32
    return %arg0, %arg1, %c0_i32 : i32, i32, i32
  }
}

module attributes {stable_mosaic.version = 11 : i64} {
  func.func @attn_core_kernel(%arg0: i32, %arg1: i32, %arg2: memref<1x4x16x8xbf16, #tpu.memory_space<vmem>>, %arg3: memref<1x4x16x8xbf16, #tpu.memory_space<vmem>>, %arg4: memref<1x4x16x8xbf16, #tpu.memory_space<vmem>>, %arg5: memref<1x4x16x8xbf16, #tpu.memory_space<vmem>>) attributes {dimension_semantics = [#tpu.dimension_semantics<parallel>, #tpu.dimension_semantics<parallel>], iteration_bounds = array<i64: 2, 1>, scalar_prefetch = 0 : i64, scratch_operands = 0 : i64, tpu.core_type = #tpu.core_type<tc>, window_params = [{transform_indices = @transform_0, window_bounds = array<i64: 1, 4, 16, 8>}, {transform_indices = @transform_1, window_bounds = array<i64: 1, 4, 16, 8>}, {transform_indices = @transform_2, window_bounds = array<i64: 1, 4, 16, 8>}, {transform_indices = @transform_3, window_bounds = array<i64: 1, 4, 16, 8>}]} {
    %c0 = arith.constant 0 : index
    %c0_0 = arith.constant 0 : index
    %c0_1 = arith.constant 0 : index
    %c0_2 = arith.constant 0 : index
    %0 = vector.load %arg2[%c0, %c0_0, %c0_1, %c0_2] : memref<1x4x16x8xbf16, #tpu.memory_space<vmem>>, vector<1x4x16x8xbf16>
    %1 = vector.shape_cast %0 : vector<1x4x16x8xbf16> to vector<4x16x8xbf16>
    %c0_3 = arith.constant 0 : index
    %c0_4 = arith.constant 0 : index
    %c0_5 = arith.constant 0 : index
    %c0_6 = arith.constant 0 : index
    %2 = vector.load %arg3[%c0_3, %c0_4, %c0_5, %c0_6] : memref<1x4x16x8xbf16, #tpu.memory_space<vmem>>, vector<1x4x16x8xbf16>
    %3 = vector.shape_cast %2 : vector<1x4x16x8xbf16> to vector<4x16x8xbf16>
    %c0_7 = arith.constant 0 : index
    %c0_8 = arith.constant 0 : index
    %c0_9 = arith.constant 0 : index
    %c0_10 = arith.constant 0 : index
    %4 = vector.load %arg4[%c0_7, %c0_8, %c0_9, %c0_10] : memref<1x4x16x8xbf16, #tpu.memory_space<vmem>>, vector<1x4x16x8xbf16>
    %5 = vector.shape_cast %4 : vector<1x4x16x8xbf16> to vector<4x16x8xbf16>
    "tpu.trace_start"() <{level = 10 : i32, message = "hqe,hke->hqk"}> : () -> ()
    %cst = arith.constant dense<0.000000e+00> : vector<4x16x16xf32>
    %6 = tpu.matmul %1, %3, %cst {dimension_numbers = #tpu.dot_dimension_numbers<[2], [2], [1], [1], [0, 0, 0, 1, 1, 1], [0], [0]>} : vector<4x16x8xbf16>, vector<4x16x8xbf16>, vector<4x16x16xf32> -> vector<4x16x16xf32>
    "tpu.trace_stop"() : () -> ()
    %cst_11 = arith.constant dense<0xFF800000> : vector<4x16xf32>
    %7 = vector.multi_reduction <maximumf>, %6, %cst_11 [2] : vector<4x16x16xf32> to vector<4x16xf32>
    %8 = vector.shape_cast %7 : vector<4x16xf32> to vector<4x16x1xf32>
    %9 = vector.broadcast %8 : vector<4x16x1xf32> to vector<4x16x16xf32>
    %10 = arith.subf %6, %9 : vector<4x16x16xf32>
    %11 = math.exp %10 : vector<4x16x16xf32>
    %cst_12 = arith.constant dense<0.000000e+00> : vector<4x16xf32>
    %12 = vector.multi_reduction <add>, %11, %cst_12 [2] : vector<4x16x16xf32> to vector<4x16xf32>
    %13 = vector.shape_cast %12 : vector<4x16xf32> to vector<4x16x1xf32>
    %14 = tpu.reciprocal %13 {approx = true} : vector<4x16x1xf32> -> vector<4x16x1xf32>
    %15 = vector.broadcast %14 : vector<4x16x1xf32> to vector<4x16x16xf32>
    %16 = arith.mulf %11, %15 : vector<4x16x16xf32>
    %17 = arith.truncf %16 : vector<4x16x16xf32> to vector<4x16x16xbf16>
    "tpu.trace_start"() <{level = 10 : i32, message = "hqk,hke->hqe"}> : () -> ()
    %cst_13 = arith.constant dense<0.000000e+00> : vector<4x16x8xf32>
    %18 = tpu.matmul %17, %5, %cst_13 {dimension_numbers = #tpu.dot_dimension_numbers<[2], [1], [1], [2], [0, 0, 0, 1, 1, 2], [0], [0]>} : vector<4x16x16xbf16>, vector<4x16x8xbf16>, vector<4x16x8xf32> -> vector<4x16x8xf32>
    "tpu.trace_stop"() : () -> ()
    %19 = arith.truncf %18 : vector<4x16x8xf32> to vector<4x16x8xbf16>
    %c0_14 = arith.constant 0 : index
    %c0_15 = arith.constant 0 : index
    %c0_16 = arith.constant 0 : index
    %c0_17 = arith.constant 0 : index
    %20 = vector.load %arg5[%c0_14, %c0_15, %c0_16, %c0_17] : memref<1x4x16x8xbf16, #tpu.memory_space<vmem>>, vector<1x4x16x8xbf16>
    %21 = vector.shape_cast %20 : vector<1x4x16x8xbf16> to vector<4x16x8xbf16>
    %22 = vector.shape_cast %19 : vector<4x16x8xbf16> to vector<1x4x16x8xbf16>
    tpu.vector_store %arg5[%c0_14, %c0_15, %c0_16, %c0_17], %22 {strides = array<i32>} : memref<1x4x16x8xbf16, #tpu.memory_space<vmem>>, vector<1x4x16x8xbf16>,
    return
  }
  func.func @transform_0(%arg0: i32, %arg1: i32) -> (i32, i32, i32, i32) {
    %c0_i32 = arith.constant 0 : i32
    %c0_i32_0 = arith.constant 0 : i32
    %c0_i32_1 = arith.constant 0 : i32
    return %arg0, %c0_i32, %arg1, %c0_i32_0 : i32, i32, i32, i32
  }
  func.func @transform_1(%arg0: i32, %arg1: i32) -> (i32, i32, i32, i32) {
    %c0_i32 = arith.constant 0 : i32
    %c0_i32_0 = arith.constant 0 : i32
    %c0_i32_1 = arith.constant 0 : i32
    %c0_i32_2 = arith.constant 0 : i32
    return %arg0, %c0_i32, %c0_i32_0, %c0_i32_1 : i32, i32, i32, i32
  }
  func.func @transform_2(%arg0: i32, %arg1: i32) -> (i32, i32, i32, i32) {
    %c0_i32 = arith.constant 0 : i32
    %c0_i32_0 = arith.constant 0 : i32
    %c0_i32_1 = arith.constant 0 : i32
    %c0_i32_2 = arith.constant 0 : i32
    return %arg0, %c0_i32, %c0_i32_0, %c0_i32_1 : i32, i32, i32, i32
  }
  func.func @transform_3(%arg0: i32, %arg1: i32) -> (i32, i32, i32, i32) {
    %c0_i32 = arith.constant 0 : i32
    %c0_i32_0 = arith.constant 0 : i32
    %c0_i32_1 = arith.constant 0 : i32
    return %arg0, %c0_i32, %arg1, %c0_i32_0 : i32, i32, i32, i32
  }
}

module attributes {stable_mosaic.version = 11 : i64} {
  func.func @proj_mlp_kernel(%arg0: i32, %arg1: i32, %arg2: memref<1x16x32xbf16, #tpu.memory_space<vmem>>, %arg3: memref<1x16x32xbf16, #tpu.memory_space<vmem>>, %arg4: memref<32x32xbf16, #tpu.memory_space<vmem>>, %arg5: memref<1x32xf32, #tpu.memory_space<vmem>>, %arg6: memref<1x32xf32, #tpu.memory_space<vmem>>, %arg7: memref<1x32xf32, #tpu.memory_space<vmem>>, %arg8: memref<32x64xbf16, #tpu.memory_space<vmem>>, %arg9: memref<1x64xf32, #tpu.memory_space<vmem>>, %arg10: memref<64x32xbf16, #tpu.memory_space<vmem>>, %arg11: memref<1x32xf32, #tpu.memory_space<vmem>>, %arg12: memref<1x16x32xbf16, #tpu.memory_space<vmem>>) attributes {dimension_semantics = [#tpu.dimension_semantics<parallel>, #tpu.dimension_semantics<parallel>], iteration_bounds = array<i64: 2, 1>, scalar_prefetch = 0 : i64, scratch_operands = 0 : i64, tpu.core_type = #tpu.core_type<tc>, window_params = [{transform_indices = @transform_0, window_bounds = array<i64: 1, 16, 32>}, {transform_indices = @transform_1, window_bounds = array<i64: 1, 16, 32>}, {pipeline_mode = #tpu.pipeline_mode<synchronous>, transform_indices = @transform_2, window_bounds = array<i64: 32, 32>}, {pipeline_mode = #tpu.pipeline_mode<synchronous>, transform_indices = @transform_3, window_bounds = array<i64: 1, 32>}, {pipeline_mode = #tpu.pipeline_mode<synchronous>, transform_indices = @transform_4, window_bounds = array<i64: 1, 32>}, {pipeline_mode = #tpu.pipeline_mode<synchronous>, transform_indices = @transform_5, window_bounds = array<i64: 1, 32>}, {pipeline_mode = #tpu.pipeline_mode<synchronous>, transform_indices = @transform_6, window_bounds = array<i64: 32, 64>}, {pipeline_mode = #tpu.pipeline_mode<synchronous>, transform_indices = @transform_7, window_bounds = array<i64: 1, 64>}, {pipeline_mode = #tpu.pipeline_mode<synchronous>, transform_indices = @transform_8, window_bounds = array<i64: 64, 32>}, {pipeline_mode = #tpu.pipeline_mode<synchronous>, transform_indices = @transform_9, window_bounds = array<i64: 1, 32>}, {transform_indices = @transform_10, window_bounds = array<i64: 1, 16, 32>}]} {
    %c0 = arith.constant 0 : index
    %c0_0 = arith.constant 0 : index
    %c0_1 = arith.constant 0 : index
    %0 = vector.load %arg2[%c0, %c0_0, %c0_1] : memref<1x16x32xbf16, #tpu.memory_space<vmem>>, vector<1x16x32xbf16>
    %1 = vector.shape_cast %0 : vector<1x16x32xbf16> to vector<16x32xbf16>
    %c0_2 = arith.constant 0 : index
    %c0_3 = arith.constant 0 : index
    %2 = vector.load %arg4[%c0_2, %c0_3] : memref<32x32xbf16, #tpu.memory_space<vmem>>, vector<32x32xbf16>
    %cst = arith.constant dense<0.000000e+00> : vector<16x32xf32>
    %3 = tpu.matmul %1, %2, %cst {dimension_numbers = #tpu.dot_dimension_numbers<[1], [0], [0], [1], [0, 0, 1, 1], [], []>} : vector<16x32xbf16>, vector<32x32xbf16>, vector<16x32xf32> -> vector<16x32xf32>
    %c0_4 = arith.constant 0 : index
    %c0_5 = arith.constant 0 : index
    %4 = vector.load %arg5[%c0_4, %c0_5] : memref<1x32xf32, #tpu.memory_space<vmem>>, vector<1x32xf32>
    %5 = vector.broadcast %4 : vector<1x32xf32> to vector<16x32xf32>
    %6 = arith.addf %3, %5 : vector<16x32xf32>
    %c0_6 = arith.constant 0 : index
    %c0_7 = arith.constant 0 : index
    %c0_8 = arith.constant 0 : index
    %7 = vector.load %arg3[%c0_6, %c0_7, %c0_8] : memref<1x16x32xbf16, #tpu.memory_space<vmem>>, vector<1x16x32xbf16>
    %8 = vector.shape_cast %7 : vector<1x16x32xbf16> to vector<16x32xbf16>
    %9 = arith.extf %8 : vector<16x32xbf16> to vector<16x32xf32>
    %10 = arith.addf %9, %6 : vector<16x32xf32>
    %c0_9 = arith.constant 0 : index
    %c0_10 = arith.constant 0 : index
    %11 = vector.load %arg6[%c0_9, %c0_10] : memref<1x32xf32, #tpu.memory_space<vmem>>, vector<1x32xf32>
    %c0_11 = arith.constant 0 : index
    %c0_12 = arith.constant 0 : index
    %12 = vector.load %arg7[%c0_11, %c0_12] : memref<1x32xf32, #tpu.memory_space<vmem>>, vector<1x32xf32>
    %cst_13 = arith.constant dense<0.000000e+00> : vector<16xf32>
    %13 = vector.multi_reduction <add>, %10, %cst_13 [1] : vector<16x32xf32> to vector<16xf32>
    %14 = vector.shape_cast %13 : vector<16xf32> to vector<16x1xf32>
    %cst_14 = arith.constant 3.200000e+01 : f32
    %15 = vector.broadcast %cst_14 : f32 to vector<16x1xf32>
    %16 = arith.divf %14, %15 : vector<16x1xf32>
    %17 = vector.broadcast %16 : vector<16x1xf32> to vector<16x32xf32>
    %18 = arith.subf %10, %17 : vector<16x32xf32>
    %19 = arith.mulf %18, %18 : vector<16x32xf32>
    %cst_15 = arith.constant dense<0.000000e+00> : vector<16xf32>
    %20 = vector.multi_reduction <add>, %19, %cst_15 [1] : vector<16x32xf32> to vector<16xf32>
    %21 = vector.shape_cast %20 : vector<16xf32> to vector<16x1xf32>
    %cst_16 = arith.constant 3.200000e+01 : f32
    %22 = vector.broadcast %cst_16 : f32 to vector<16x1xf32>
    %23 = arith.divf %21, %22 : vector<16x1xf32>
    %cst_17 = arith.constant 9.99999997E-7 : f32
    %24 = vector.broadcast %cst_17 : f32 to vector<16x1xf32>
    %25 = arith.addf %23, %24 : vector<16x1xf32>
    %26 = math.rsqrt %25 : vector<16x1xf32>
    %27 = vector.broadcast %26 : vector<16x1xf32> to vector<16x32xf32>
    %28 = arith.mulf %18, %27 : vector<16x32xf32>
    %29 = vector.broadcast %11 : vector<1x32xf32> to vector<16x32xf32>
    %30 = arith.mulf %28, %29 : vector<16x32xf32>
    %31 = vector.broadcast %12 : vector<1x32xf32> to vector<16x32xf32>
    %32 = arith.addf %30, %31 : vector<16x32xf32>
    %33 = arith.truncf %32 : vector<16x32xf32> to vector<16x32xbf16>
    %c0_18 = arith.constant 0 : index
    %c0_19 = arith.constant 0 : index
    %34 = vector.load %arg8[%c0_18, %c0_19] : memref<32x64xbf16, #tpu.memory_space<vmem>>, vector<32x64xbf16>
    %cst_20 = arith.constant dense<0.000000e+00> : vector<16x64xf32>
    %35 = tpu.matmul %33, %34, %cst_20 {dimension_numbers = #tpu.dot_dimension_numbers<[1], [0], [0], [1], [0, 0, 1, 1], [], []>} : vector<16x32xbf16>, vector<32x64xbf16>, vector<16x64xf32> -> vector<16x64xf32>
    %c0_21 = arith.constant 0 : index
    %c0_22 = arith.constant 0 : index
    %36 = vector.load %arg9[%c0_21, %c0_22] : memref<1x64xf32, #tpu.memory_space<vmem>>, vector<1x64xf32>
    %37 = vector.broadcast %36 : vector<1x64xf32> to vector<16x64xf32>
    %38 = arith.addf %35, %37 : vector<16x64xf32>
    %cst_23 = arith.constant 5.000000e-01 : f32
    %39 = vector.broadcast %cst_23 : f32 to vector<16x64xf32>
    %40 = arith.mulf %39, %38 : vector<16x64xf32>
    %cst_24 = arith.constant 4.471500e-02 : f32
    %41 = vector.broadcast %cst_24 : f32 to vector<16x64xf32>
    %42 = arith.mulf %41, %38 : vector<16x64xf32>
    %43 = arith.mulf %42, %38 : vector<16x64xf32>
    %44 = arith.mulf %43, %38 : vector<16x64xf32>
    %45 = arith.addf %38, %44 : vector<16x64xf32>
    %cst_25 = arith.constant 0.797884583 : f32
    %46 = vector.broadcast %cst_25 : f32 to vector<16x64xf32>
    %47 = arith.mulf %46, %45 : vector<16x64xf32>
    %48 = math.tanh %47 : vector<16x64xf32>
    %cst_26 = arith.constant 1.000000e+00 : f32
    %49 = vector.broadcast %cst_26 : f32 to vector<16x64xf32>
    %50 = arith.addf %49, %48 : vector<16x64xf32>
    %51 = arith.mulf %40, %50 : vector<16x64xf32>
    %52 = arith.truncf %51 : vector<16x64xf32> to vector<16x64xbf16>
    %c0_27 = arith.constant 0 : index
    %c0_28 = arith.constant 0 : index
    %53 = vector.load %arg10[%c0_27, %c0_28] : memref<64x32xbf16, #tpu.memory_space<vmem>>, vector<64x32xbf16>
    %cst_29 = arith.constant dense<0.000000e+00> : vector<16x32xf32>
    %54 = tpu.matmul %52, %53, %cst_29 {dimension_numbers = #tpu.dot_dimension_numbers<[1], [0], [0], [1], [0, 0, 1, 1], [], []>} : vector<16x64xbf16>, vector<64x32xbf16>, vector<16x32xf32> -> vector<16x32xf32>
    %c0_30 = arith.constant 0 : index
    %c0_31 = arith.constant 0 : index
    %55 = vector.load %arg11[%c0_30, %c0_31] : memref<1x32xf32, #tpu.memory_space<vmem>>, vector<1x32xf32>
    %56 = vector.broadcast %55 : vector<1x32xf32> to vector<16x32xf32>
    %57 = arith.addf %54, %56 : vector<16x32xf32>
    %58 = arith.addf %10, %57 : vector<16x32xf32>
    %59 = arith.truncf %58 : vector<16x32xf32> to vector<16x32xbf16>
    %c0_32 = arith.constant 0 : index
    %c0_33 = arith.constant 0 : index
    %c0_34 = arith.constant 0 : index
    %60 = vector.load %arg12[%c0_32, %c0_33, %c0_34] : memref<1x16x32xbf16, #tpu.memory_space<vmem>>, vector<1x16x32xbf16>
    %61 = vector.shape_cast %60 : vector<1x16x32xbf16> to vector<16x32xbf16>
    %62 = vector.shape_cast %59 : vector<16x32xbf16> to vector<1x16x32xbf16>
    tpu.vector_store %arg12[%c0_32, %c0_33, %c0_34], %62 {strides = array<i32>} : memref<1x16x32xbf16, #tpu.memory_space<vmem>>, vector<1x16x32xbf16>,
    return
  }
  func.func @transform_0(%arg0: i32, %arg1: i32) -> (i32, i32, i32) {
    %c0_i32 = arith.constant 0 : i32
    %c0_i32_0 = arith.constant 0 : i32
    return %arg0, %arg1, %c0_i32 : i32, i32, i32
  }
  func.func @transform_1(%arg0: i32, %arg1: i32) -> (i32, i32, i32) {
    %c0_i32 = arith.constant 0 : i32
    %c0_i32_0 = arith.constant 0 : i32
    return %arg0, %arg1, %c0_i32 : i32, i32, i32
  }
  func.func @transform_2(%arg0: i32, %arg1: i32) -> (i32, i32) {
    %c0_i32 = arith.constant 0 : i32
    %c0_i32_0 = arith.constant 0 : i32
    %c0_i32_1 = arith.constant 0 : i32
    return %c0_i32, %c0_i32_0 : i32, i32
  }
  func.func @transform_3(%arg0: i32, %arg1: i32) -> (i32, i32) {
    %c0_i32 = arith.constant 0 : i32
    %c0_i32_0 = arith.constant 0 : i32
    %c0_i32_1 = arith.constant 0 : i32
    return %c0_i32, %c0_i32_0 : i32, i32
  }
  func.func @transform_4(%arg0: i32, %arg1: i32) -> (i32, i32) {
    %c0_i32 = arith.constant 0 : i32
    %c0_i32_0 = arith.constant 0 : i32
    %c0_i32_1 = arith.constant 0 : i32
    return %c0_i32, %c0_i32_0 : i32, i32
  }
  func.func @transform_5(%arg0: i32, %arg1: i32) -> (i32, i32) {
    %c0_i32 = arith.constant 0 : i32
    %c0_i32_0 = arith.constant 0 : i32
    %c0_i32_1 = arith.constant 0 : i32
    return %c0_i32, %c0_i32_0 : i32, i32
  }
  func.func @transform_6(%arg0: i32, %arg1: i32) -> (i32, i32) {
    %c0_i32 = arith.constant 0 : i32
    %c0_i32_0 = arith.constant 0 : i32
    %c0_i32_1 = arith.constant 0 : i32
    return %c0_i32, %c0_i32_0 : i32, i32
  }
  func.func @transform_7(%arg0: i32, %arg1: i32) -> (i32, i32) {
    %c0_i32 = arith.constant 0 : i32
    %c0_i32_0 = arith.constant 0 : i32
    %c0_i32_1 = arith.constant 0 : i32
    return %c0_i32, %c0_i32_0 : i32, i32
  }
  func.func @transform_8(%arg0: i32, %arg1: i32) -> (i32, i32) {
    %c0_i32 = arith.constant 0 : i32
    %c0_i32_0 = arith.constant 0 : i32
    %c0_i32_1 = arith.constant 0 : i32
    return %c0_i32, %c0_i32_0 : i32, i32
  }
  func.func @transform_9(%arg0: i32, %arg1: i32) -> (i32, i32) {
    %c0_i32 = arith.constant 0 : i32
    %c0_i32_0 = arith.constant 0 : i32
    %c0_i32_1 = arith.constant 0 : i32
    return %c0_i32, %c0_i32_0 : i32, i32
  }
  func.func @transform_10(%arg0: i32, %arg1: i32) -> (i32, i32, i32) {
    %c0_i32 = arith.constant 0 : i32
    %c0_i32_0 = arith.constant 0 : i32
    return %arg0, %arg1, %c0_i32 : i32, i32, i32
  }
}

module attributes {stable_mosaic.version = 11 : i64} {
  func.func @post_ln_kernel(%arg0: i32, %arg1: i32, %arg2: memref<1x16x32xbf16, #tpu.memory_space<vmem>>, %arg3: memref<1x32xf32, #tpu.memory_space<vmem>>, %arg4: memref<1x32xf32, #tpu.memory_space<vmem>>, %arg5: memref<1x16x32xf32, #tpu.memory_space<vmem>>) attributes {dimension_semantics = [#tpu.dimension_semantics<parallel>, #tpu.dimension_semantics<parallel>], iteration_bounds = array<i64: 2, 1>, scalar_prefetch = 0 : i64, scratch_operands = 0 : i64, tpu.core_type = #tpu.core_type<tc>, window_params = [{transform_indices = @transform_0, window_bounds = array<i64: 1, 16, 32>}, {pipeline_mode = #tpu.pipeline_mode<synchronous>, transform_indices = @transform_1, window_bounds = array<i64: 1, 32>}, {pipeline_mode = #tpu.pipeline_mode<synchronous>, transform_indices = @transform_2, window_bounds = array<i64: 1, 32>}, {transform_indices = @transform_3, window_bounds = array<i64: 1, 16, 32>}]} {
    %c0 = arith.constant 0 : index
    %c0_0 = arith.constant 0 : index
    %c0_1 = arith.constant 0 : index
    %0 = vector.load %arg2[%c0, %c0_0, %c0_1] : memref<1x16x32xbf16, #tpu.memory_space<vmem>>, vector<1x16x32xbf16>
    %1 = vector.shape_cast %0 : vector<1x16x32xbf16> to vector<16x32xbf16>
    %2 = arith.extf %1 : vector<16x32xbf16> to vector<16x32xf32>
    %c0_2 = arith.constant 0 : index
    %c0_3 = arith.constant 0 : index
    %3 = vector.load %arg3[%c0_2, %c0_3] : memref<1x32xf32, #tpu.memory_space<vmem>>, vector<1x32xf32>
    %c0_4 = arith.constant 0 : index
    %c0_5 = arith.constant 0 : index
    %4 = vector.load %arg4[%c0_4, %c0_5] : memref<1x32xf32, #tpu.memory_space<vmem>>, vector<1x32xf32>
    %cst = arith.constant dense<0.000000e+00> : vector<16xf32>
    %5 = vector.multi_reduction <add>, %2, %cst [1] : vector<16x32xf32> to vector<16xf32>
    %6 = vector.shape_cast %5 : vector<16xf32> to vector<16x1xf32>
    %cst_6 = arith.constant 3.200000e+01 : f32
    %7 = vector.broadcast %cst_6 : f32 to vector<16x1xf32>
    %8 = arith.divf %6, %7 : vector<16x1xf32>
    %9 = vector.broadcast %8 : vector<16x1xf32> to vector<16x32xf32>
    %10 = arith.subf %2, %9 : vector<16x32xf32>
    %11 = arith.mulf %10, %10 : vector<16x32xf32>
    %cst_7 = arith.constant dense<0.000000e+00> : vector<16xf32>
    %12 = vector.multi_reduction <add>, %11, %cst_7 [1] : vector<16x32xf32> to vector<16xf32>
    %13 = vector.shape_cast %12 : vector<16xf32> to vector<16x1xf32>
    %cst_8 = arith.constant 3.200000e+01 : f32
    %14 = vector.broadcast %cst_8 : f32 to vector<16x1xf32>
    %15 = arith.divf %13, %14 : vector<16x1xf32>
    %cst_9 = arith.constant 9.99999997E-7 : f32
    %16 = vector.broadcast %cst_9 : f32 to vector<16x1xf32>
    %17 = arith.addf %15, %16 : vector<16x1xf32>
    %18 = math.rsqrt %17 : vector<16x1xf32>
    %19 = vector.broadcast %18 : vector<16x1xf32> to vector<16x32xf32>
    %20 = arith.mulf %10, %19 : vector<16x32xf32>
    %21 = vector.broadcast %3 : vector<1x32xf32> to vector<16x32xf32>
    %22 = arith.mulf %20, %21 : vector<16x32xf32>
    %23 = vector.broadcast %4 : vector<1x32xf32> to vector<16x32xf32>
    %24 = arith.addf %22, %23 : vector<16x32xf32>
    %c0_10 = arith.constant 0 : index
    %c0_11 = arith.constant 0 : index
    %c0_12 = arith.constant 0 : index
    %25 = vector.load %arg5[%c0_10, %c0_11, %c0_12] : memref<1x16x32xf32, #tpu.memory_space<vmem>>, vector<1x16x32xf32>
    %26 = vector.shape_cast %25 : vector<1x16x32xf32> to vector<16x32xf32>
    %27 = vector.shape_cast %24 : vector<16x32xf32> to vector<1x16x32xf32>
    tpu.vector_store %arg5[%c0_10, %c0_11, %c0_12], %27 {strides = array<i32>} : memref<1x16x32xf32, #tpu.memory_space<vmem>>, vector<1x16x32xf32>,
    return
  }
  func.func @transform_0(%arg0: i32, %arg1: i32) -> (i32, i32, i32) {
    %c0_i32 = arith.constant 0 : i32
    %c0_i32_0 = arith.constant 0 : i32
    return %arg0, %arg1, %c0_i32 : i32, i32, i32
  }
  func.func @transform_1(%arg0: i32, %arg1: i32) -> (i32, i32) {
    %c0_i32 = arith.constant 0 : i32
    %c0_i32_0 = arith.constant 0 : i32
    %c0_i32_1 = arith.constant 0 : i32
    return %c0_i32, %c0_i32_0 : i32, i32
  }
  func.func @transform_2(%arg0: i32, %arg1: i32) -> (i32, i32) {
    %c0_i32 = arith.constant 0 : i32
    %c0_i32_0 = arith.constant 0 : i32
    %c0_i32_1 = arith.constant 0 : i32
    return %c0_i32, %c0_i32_0 : i32, i32
  }
  func.func @transform_3(%arg0: i32, %arg1: i32) -> (i32, i32, i32) {
    %c0_i32 = arith.constant 0 : i32
    %c0_i32_0 = arith.constant 0 : i32
    return %arg0, %arg1, %c0_i32 : i32, i32, i32
  }
}

</mosaic_0001>

<bundles_post_ra>
// kernel: siglip_vision_forward.8
= control target key start
LH: loop header
LB: loop body
LE: loop exit
PB: predicated region body
PF: predicated region fallthrough
CT: control target
= control target key end

     0   :  { %s533_s15 = smov 0   ;;  %s535_s16 = smov 0   ;;  %s584_s0 = inlined_call_operand.vmem [shape: bf16[2,16,48], index: 0, kind: input, shape index: {}]   ;;  %s585_s1 = inlined_call_operand.vmem [shape: bf16[48,32], index: 1, kind: input, shape index: {}]   ;;  %s586_s2 = inlined_call_operand.vmem [shape: f32[1,32], index: 2, kind: input, shape index: {}]   ;;  %s587_s3 = inlined_call_operand.vmem [shape: f32[16,32], index: 3, kind: input, shape index: {}]   ;;  %s588_s4 = inlined_call_operand.vmem [shape: bf16[2,16,32], index: 4, kind: output, shape index: {}]  }
   0x1   :  { %s537_s17 = smov 0  }
   0x2 LB: > { %s26_s18 = sadd.s32 1, %s502_s16  ;;  %p429_p0 = scmp.ge.s32.totalorder %s506_s17, 1  ;;  %s506_s17 = sphi %s537_s17, %s14_s17   ;;  %s502_s16 = sphi %s535_s16, %s590_s16   ;;  %s498_s15 = sphi %s533_s15, %s589_s15  }
   0x3   : > { %p28_p1 = scmp.ge.s32.totalorder %s26_s18, 2  ;;  %p194_p2 = scmp.lt.s32.totalorder %s506_s17, 3 }
   0x5   : > { %s592_s18 = smov (%p28_p1, %s26_s18), 0  ;;  %p195_p3 = pnand %p429_p0, %p194_p2 }
   0x6   : > { %p234_p4 = scmp.lt.s32.totalorder (!%p195_p3), %s498_s15, 1 }
   0x7   : > { %198 = sbr.rel (%p195_p3) target bundleno = 165 (0xa5), region = 36 }
   0xc   : > { %v458_v0 = vld [vmem:[%s585_s1 + $0x10] sm:$0xff]  ;;  %v457_v1 = vld [vmem:[%s585_s1 + $0x8] sm:$0xff]  ;;  %s594_s15 = smov (!%p234_p4, %s498_s15), 1  ;;  %v456_v2 = vld [vmem:[%s585_s1] sm:$0xff]  ;;  %vm295_vm0 = vcmask 392192   ;;  %vm319_vm1 = vcmask 257024  }
   0xd   : > { %304 = vmatpush.bf16.msra.mxu0 %v458_v0  ;;  %s453_s23 = sshll.u32 %s594_s15, 3  ;;  %v483_v4 = vld [vmem:[%s586_s2] ss:$0 sm:$0xff]  ;;  %v314_v11 = vld [vmem:[%s587_s3 + $0x8] sm:$0xff] }
   0xe   : > { %s241_s28 = scalar_lea.vmem %s584_s0, %s453_s23  ;;  %v313_v6 = vld [vmem:[%s587_s3] sm:$0xff]  ;;  %s257_s9 = scalar_lea.vmem %s588_s4, %s453_s23 }
   0xf   : > { %v455_v3 = vld [vmem:[%s241_s28] sm:$0xff] }
  0x11   : > { %305 = vmatpush.bf16.msra.mxu0 %v457_v1 }
  0x15   : > { %306 = vmatpush.bf16.msra.mxu0 %v456_v2 }
  0x18   : > { %450 = vmatmul.msk.bf16.vlgmr.msra.gmra.mxu0 %vm295_vm0, %v455_v3 }
  0x95   : > { %v308_v5 = vpop.f32.mrf.mxu0 }
  0x96   : > { %v309_v7 = vadd.f32 %v483_v4, %v308_v5 }
  0x98   : > { %v315_v8 = vadd.f32 %v313_v6, %v309_v7 }
  0x9a   : > { %v317_v9 = vpack.c.bf16 %v315_v8, %v315_v8 }
  0x9c   : > { %320 = vst.msk [vmem:[%s257_s9] sm:$0xf] %vm319_vm1, %v317_v9 }
  0x9d   : > { %v310_v10 = vpop.f32.mrf.mxu0 }
  0x9e   : > { %v311_v12 = vadd.f32 %v483_v4, %v310_v10 }
  0xa0   : > { %v316_v13 = vadd.f32 %v314_v11, %v311_v12 }
  0xa2   : > { %v318_v14 = vpack.c.bf16 %v316_v13, %v316_v13 }
  0xa4   : > { %321 = vst.msk [vmem:[%s257_s9 + $0x4] sm:$0xf] %vm319_vm1, %v318_v14 }
  0xa5 PF: > { %s14_s17 = sadd.s32 1, %s506_s17   ;;  %s589_s15 = smov %s502_s16 }
  0xa6   : > { %p11_p5 = scmp.ge.s32.totalorder %s14_s17, 4   ;;  %s590_s16 = smov %s592_s18 }
  0xa8   :  { %13 = sbr.rel (!%p11_p5) target bundleno = 2 (0x2), region = 69 }

// kernel: siglip_vision_forward.9
= control target key start
LH: loop header
LB: loop body
LE: loop exit
PB: predicated region body
PF: predicated region fallthrough
CT: control target
= control target key end

     0   :  { %s580_s18 = smov 0   ;;  %s582_s19 = smov 0   ;;  %s640_s0 = inlined_call_operand.vmem [shape: bf16[2,16,32], index: 0, kind: input, shape index: {}]   ;;  %s641_s1 = inlined_call_operand.vmem [shape: f32[1,32], index: 1, kind: input, shape index: {}]   ;;  %s642_s2 = inlined_call_operand.vmem [shape: f32[1,32], index: 2, kind: input, shape index: {}]   ;;  %s643_s3 = inlined_call_operand.vmem [shape: bf16[32,96], index: 3, kind: input, shape index: {}]   ;;  %s644_s4 = inlined_call_operand.vmem [shape: f32[1,96], index: 4, kind: input, shape index: {}]   ;;  %s645_s5 = inlined_call_operand.vmem [shape: bf16[2,16,96], index: 5, kind: output, shape index: {}]  }
   0x1   :  { %s584_s20 = smov 0  }
   0x2 LB: > { %s27_s21 = sadd.s32 1, %s543_s19  ;;  %p467_p0 = scmp.ge.s32.totalorder %s547_s20, 1  ;;  %s547_s20 = sphi %s584_s20, %s15_s20   ;;  %s543_s19 = sphi %s582_s19, %s647_s19   ;;  %s539_s18 = sphi %s580_s18, %s646_s18  }
   0x3   : > { %p29_p1 = scmp.ge.s32.totalorder %s27_s21, 2  ;;  %p208_p2 = scmp.lt.s32.totalorder %s547_s20, 3 }
   0x5   : > { %s649_s21 = smov (%p29_p1, %s27_s21), 0  ;;  %p209_p3 = pnand %p467_p0, %p208_p2 }
   0x6   : > { %p245_p4 = scmp.lt.s32.totalorder (!%p209_p3), %s539_s18, 1 }
   0x7   : > { %212 = sbr.rel (%p209_p3) target bundleno = 435 (0x1b3), region = 40 }
   0xc   : > { %s651_s18 = smov (!%p245_p4, %s539_s18), 1  ;;  %vm271_vm0 = vcmask 261120   ;;  %v549_v5 = vmov 32.0   ;;  %v486_v22 = vld [vmem:[%s643_s3 + $0x8] sm:$0xff]  ;;  %v485_v24 = vld [vmem:[%s643_s3] sm:$0xff]  ;;  %vm373_vm8 = vcmask 781312  }
   0xd   : > { %s483_s22 = sshll.u32 %s651_s18, 3  ;;  %519 = vrcp.f32 %v549_v5  ;;  %363 = vmatpush.bf16.msra.mxu0 %v486_v22  ;;  %v516_v43 = vld [vmem:[%s641_s1] ss:$0 sm:$0xff] }
   0xe   : > { %s252_s25 = scalar_lea.vmem %s640_s0, %s483_s22  ;;  %v517_v48 = vld [vmem:[%s642_s2] ss:$0 sm:$0xff]  ;;  %s262_s13 = scalar_lea.vmem %s645_s5, %s483_s22 }
   0xf   : > { %v488_v0 = vld [vmem:[%s252_s25] sm:$0xff]  }
  0x10   : > { %v489_v1 = vunpack.c.l.bf16 %v488_v0  ;;  %v490_v3 = vunpack.c.h.bf16 %v488_v0  ;;  %v518_v53 = vld [vmem:[%s644_s4] ss:$0 sm:$0xff] }
  0x11   : > { %364 = vmatpush.bf16.msra.mxu0 %v485_v24 }
  0x12   : > { %v272_v2 = vsel %vm271_vm0, %v489_v1, 0.0  ;;  %v275_v4 = vsel %vm271_vm0, %v490_v3, 0.0 }
  0x13   : > { %273 = vadd.xlane.f32.xlu0 %v272_v2  ;;  %v520_v6 = vpop.eup %519 }
  0x14   : > { %v279_v7 = vmul.f32 32.0, %v520_v6  ;;  %vm283_vm1 = vweird.f32 %v520_v6 }
  0x16   : > { %v280_v8 = vsub.f32 1.0, %v279_v7 }
  0x18   : > { %v281_v9 = vmul.f32 %v520_v6, %v280_v8 }
  0x1a   : > { %v282_v10 = vadd.f32 %v520_v6, %v281_v9 }
  0x1b   : > { %276 = vadd.xlane.f32.xlu0 %v275_v4 }
  0x1c   : > { %v284_v11 = vsel %vm283_vm1, %v520_v6, %v282_v10 }
  0x86   : > { %v274_v12 = vpop.xlane.xlu0 %273 }
  0x87   : > { %v285_v13 = vmul.f32 %v284_v11, %v274_v12 }
  0x89   : > { %v287_v14 = vsub.f32 %v489_v1, %v285_v13 }
  0x8b   : > { %v289_v15 = vmul.f32 %v287_v14, %v287_v14 }
  0x8d   : > { %v291_v16 = vsel %vm271_vm0, %v289_v15, 0.0 }
  0x8e   : > { %292 = vadd.xlane.f32.xlu1 %v291_v16  ;;  %v277_v17 = vpop.xlane.xlu0 %276 }
  0x8f   : > { %v286_v18 = vmul.f32 %v284_v11, %v277_v17 }
  0x91   : > { %v288_v19 = vsub.f32 %v490_v3, %v286_v18 }
  0x93   : > { %v290_v20 = vmul.f32 %v288_v19, %v288_v19 }
  0x95   : > { %v294_v21 = vsel %vm271_vm0, %v290_v20, 0.0 }
  0x96   : > { %295 = vadd.xlane.f32.xlu1 %v294_v21 }
 0x101   : > { %v293_v23 = vpop.xlane.xlu1 %292 }
 0x102   : > { %v297_v25 = vmul.f32 %v293_v23, %v284_v11 }
 0x104   : > { %v299_v26 = vadd.f32 1e-06, %v297_v25 }
 0x106   : > { %521 = vrsqrt.f32 %v299_v26  ;;  %vm307_vm3 = vweird.f32 %v299_v26 }
 0x109   : > { %v296_v27 = vpop.xlane.xlu1 %295 }
 0x10a   : > { %v298_v28 = vmul.f32 %v296_v27, %v284_v11 }
 0x10c   : > { %v522_v29 = vpop.eup %521  ;;  %v300_v30 = vadd.f32 1e-06, %v298_v28 }
 0x10d   : > { %v302_v31 = vmul.f32 %v522_v29, %v299_v26  ;;  %vm308_vm2 = vweird.f32 %v522_v29 }
 0x10e   : > { %523 = vrsqrt.f32 %v300_v30  ;;  %vm309_vm4 = vmor %vm307_vm3, %vm308_vm2  ;;  %vm317_vm6 = vweird.f32 %v300_v30 }
 0x10f   : > { %v303_v32 = vmul.f32 %v522_v29, %v302_v31 }
 0x111   : > { %v304_v33 = vmul.f32 0.5, %v303_v32 }
 0x113   : > { %v305_v34 = vsub.f32 1.5, %v304_v33 }
 0x114   : > { %v524_v35 = vpop.eup %523 }
 0x115   : > { %v306_v36 = vmul.f32 %v522_v29, %v305_v34  ;;  %v312_v37 = vmul.f32 %v524_v35, %v300_v30  ;;  %vm318_vm5 = vweird.f32 %v524_v35 }
 0x116   : > { %vm319_vm7 = vmor %vm317_vm6, %vm318_vm5 }
 0x117   : > { %v313_v38 = vmul.f32 %v524_v35, %v312_v37  ;;  %v310_v39 = vsel %vm309_vm4, %v522_v29, %v306_v36 }
 0x118   : > { %v321_v42 = vmul.f32 %v310_v39, %v287_v14 }
 0x119   : > { %v314_v40 = vmul.f32 0.5, %v313_v38 }
 0x11a   : > { %v326_v47 = vmul.f32 %v516_v43, %v321_v42 }
 0x11b   : > { %v315_v41 = vsub.f32 1.5, %v314_v40 }
 0x11c   : > { %v331_v50 = vadd.f32 %v517_v48, %v326_v47 }
 0x11d   : > { %v316_v44 = vmul.f32 %v524_v35, %v315_v41 }
 0x11f   : > { %v320_v45 = vsel %vm319_vm7, %v524_v35, %v316_v44 }
 0x120   : > { %v322_v46 = vmul.f32 %v320_v45, %v288_v19 }
 0x122   : > { %v327_v49 = vmul.f32 %v516_v43, %v322_v46 }
 0x124   : > { %v332_v51 = vadd.f32 %v517_v48, %v327_v49 }
 0x126   : > { %v333_v52 = vpack.c.bf16 %v332_v51, %v331_v50 }
 0x128   : > { %480 = vmatmul.msk.bf16.vlgmr.msra.gmra.mxu0 %vm271_vm0, %v333_v52 }
 0x1a5   : > { %v366_v54 = vpop.f32.mrf.mxu0 }
 0x1a6   : > { %v367_v55 = vadd.f32 %v518_v53, %v366_v54 }
 0x1a8   : > { %v371_v56 = vpack.c.bf16 %v367_v55, %v367_v55 }
 0x1aa   : > { %374 = vst.msk [vmem:[%s262_s13] sm:$0xf] %vm373_vm8, %v371_v56 }
 0x1ad   : > { %v368_v57 = vpop.f32.mrf.mxu0 }
 0x1ae   : > { %v369_v58 = vadd.f32 %v518_v53, %v368_v57 }
 0x1b0   : > { %v372_v59 = vpack.c.bf16 %v369_v58, %v369_v58 }
 0x1b2   : > { %375 = vst.msk [vmem:[%s262_s13 + $0x4] sm:$0xf] %vm373_vm8, %v372_v59 }
 0x1b3 PF: > { %s15_s20 = sadd.s32 1, %s547_s20   ;;  %s646_s18 = smov %s543_s19 }
 0x1b4   : > { %p12_p5 = scmp.ge.s32.totalorder %s15_s20, 4   ;;  %s647_s19 = smov %s649_s21 }
 0x1b6   :  { %14 = sbr.rel (!%p12_p5) target bundleno = 2 (0x2), region = 70 }

// kernel: siglip_vision_forward.10
= control target key start
LH: loop header
LB: loop body
LE: loop exit
PB: predicated region body
PF: predicated region fallthrough
CT: control target
= control target key end

     0   :  { %s920_s12 = smov 0   ;;  %s922_s13 = smov 0   ;;  %s1009_s0 = inlined_call_operand.vmem [shape: bf16[2,4,16,8], index: 0, kind: input, shape index: {}]   ;;  %s1010_s1 = inlined_call_operand.vmem [shape: bf16[2,4,16,8], index: 1, kind: input, shape index: {}]   ;;  %s1011_s2 = inlined_call_operand.vmem [shape: bf16[2,4,16,8], index: 2, kind: input, shape index: {}]   ;;  %s1012_s3 = inlined_call_operand.vmem [shape: bf16[2,4,16,8], index: 3, kind: output, shape index: {}]  }
   0x1   :  { %s924_s14 = smov 0  }
   0x2 LB: > { %s25_s15 = sadd.s32 1, %s894_s13  ;;  %p737_p0 = scmp.ge.s32.totalorder %s898_s14, 1  ;;  %s898_s14 = sphi %s924_s14, %s13_s14   ;;  %s894_s13 = sphi %s922_s13, %s1014_s13   ;;  %s890_s12 = sphi %s920_s12, %s1013_s12  }
   0x3   : > { %p27_p1 = scmp.ge.s32.totalorder %s25_s15, 2  ;;  %p178_p2 = scmp.lt.s32.totalorder %s898_s14, 3 }
   0x5   : > { %s1016_s15 = smov (%p27_p1, %s25_s15), 0  ;;  %p179_p3 = pnand %p737_p0, %p178_p2 }
   0x6   : > { %p221_p4 = scmp.lt.s32.totalorder (!%p179_p3), %s890_s12, 1 }
   0x7   : > { %182 = sbr.rel (%p179_p3) target bundleno = 571 (0x23b), region = 32 }
   0xc   : > { %s1018_s12 = smov (!%p221_p4, %s890_s12), 1  ;;  %vm285_vm0 = vcmask 64512   ;;  %vm396_vm1 = vcmask 130048   ;;  %vm613_vm2 = vcmask 60416  }
   0xd   : > { %s938_s16 = sshll.u32 %s1018_s12, 5 }
   0xe   : > { %s234_s19 = scalar_lea.vmem %s1010_s1, %s938_s16  ;;  %s228_s22 = scalar_lea.vmem %s1009_s0, %s938_s16 }
   0xf   : > { %v812_v0 = vld [vmem:[%s234_s19] sm:$0xff]  ;;  %v814_v1 = vld [vmem:[%s234_s19 + $0x10] sm:$0xff]  ;;  %v815_v2 = vld [vmem:[%s234_s19 + $0x18] sm:$0xff]  ;;  %s239_s25 = scalar_lea.vmem %s1011_s2, %s938_s16  ;;  %s248_s28 = scalar_lea.vmem %s1012_s3, %s938_s16 }
  0x10   : > { %v813_v3 = vld [vmem:[%s234_s19 + $0x8] sm:$0xff]  ;;  %v290_v4 = vsel %vm285_vm0, %v812_v0, 0  ;;  %v350_v5 = vsel %vm285_vm0, %v814_v1, 0  ;;  %v380_v6 = vsel %vm285_vm0, %v815_v2, 0  ;;  %v808_v8 = vld [vmem:[%s228_s22] sm:$0xff]  ;;  %v810_v9 = vld [vmem:[%s228_s22 + $0x10] sm:$0xff] }
  0x11   : > { %299 = vmatpush.bf16.xpose.msra.mxu0 %v290_v4  ;;  %359 = vmatpush.bf16.xpose.msra.mxu2 %v350_v5  ;;  %v320_v7 = vsel %vm285_vm0, %v813_v3, 0  ;;  %v811_v10 = vld [vmem:[%s228_s22 + $0x18] sm:$0xff]  ;;  %v809_v11 = vld [vmem:[%s228_s22 + $0x8] sm:$0xff]  ;;  %v818_v4 = vld [vmem:[%s239_s25 + $0x10] sm:$0xff] }
  0x12   : > { %389 = vmatpush.bf16.xpose.msra.mxu3 %v380_v6  ;;  %329 = vmatpush.bf16.xpose.msra.mxu1 %v320_v7  ;;  %v819_v5 = vld [vmem:[%s239_s25 + $0x18] sm:$0xff]  ;;  %v816_v6 = vld [vmem:[%s239_s25] sm:$0xff]  ;;  %v817_v7 = vld [vmem:[%s239_s25 + $0x8] sm:$0xff] }
  0x18   : > { %754 = vmatmul.msk.bf16.vlgmr.msra.gmra.mxu0 %vm285_vm0, %v808_v8  ;;  %772 = vmatmul.msk.bf16.vlgmr.msra.gmra.mxu2 %vm285_vm0, %v810_v9 }
  0x19   : > { %781 = vmatmul.msk.bf16.vlgmr.msra.gmra.mxu3 %vm285_vm0, %v811_v10  ;;  %763 = vmatmul.msk.bf16.vlgmr.msra.gmra.mxu1 %vm285_vm0, %v809_v11 }
  0x1a   : > { %570 = vmatpush.bf16.msrb.mxu2 %v818_v4  ;;  %598 = vmatpush.bf16.msrb.mxu3 %v819_v5 }
  0x1b   : > { %514 = vmatpush.bf16.msrb.mxu0 %v816_v6  ;;  %542 = vmatpush.bf16.msrb.mxu1 %v817_v7 }
  0x95   : > { %v301_v12 = vpop.f32.mrf.mxu0 }
  0x96   : > { %v397_v13 = vsel %vm396_vm1, %v301_v12, -inf  ;;  %v331_v20 = vpop.f32.mrf.mxu1 }
  0x97   : > { %398 = vmax.xlane.f32.xlu2 %v397_v13  ;;  %v403_v26 = vsel %vm396_vm1, %v331_v20, -inf }
  0x9b   : > { %v361_v14 = vpop.f32.mrf.mxu2 }
  0x9c   : > { %v391_v15 = vpop.f32.mrf.mxu3  ;;  %v409_v16 = vsel %vm396_vm1, %v361_v14, -inf }
  0x9d   : > { %v415_v17 = vsel %vm396_vm1, %v391_v15, -inf  ;;  %410 = vmax.xlane.f32.xlu0 %v409_v16  ;;  %v303_v18 = vpop.f32.mrf.mxu0 }
  0x9e   : > { %416 = vmax.xlane.f32.xlu1 %v415_v17  ;;  %v400_v19 = vsel %vm396_vm1, %v303_v18, -inf  ;;  %v333_v25 = vpop.f32.mrf.mxu1 }
  0x9f   : > { %401 = vmax.xlane.f32.xlu2 %v400_v19  ;;  %v406_v27 = vsel %vm396_vm1, %v333_v25, -inf }
  0xa3   : > { %v363_v21 = vpop.f32.mrf.mxu2 }
  0xa4   : > { %v393_v22 = vpop.f32.mrf.mxu3  ;;  %v412_v23 = vsel %vm396_vm1, %v363_v21, -inf }
  0xa5   : > { %v418_v24 = vsel %vm396_vm1, %v393_v22, -inf  ;;  %413 = vmax.xlane.f32.xlu0 %v412_v23 }
  0xa6   : > { %419 = vmax.xlane.f32.xlu1 %v418_v24 }
  0xad   : > { %404 = vmax.xlane.f32.xlu0 %v403_v26 }
  0xae   : > { %407 = vmax.xlane.f32.xlu1 %v406_v27 }
 0x10a   : > { %v399_v28 = vpop.xlane.xlu2 %398 }
 0x10b   : > { %v421_v29 = vsub.f32 %v301_v12, %v399_v28 }
 0x10d   : > { %v429_v30 = vmul.f32 1.442695, %v421_v29 }
 0x10f   : > { %844 = vpow2.f32 %v429_v30 }
 0x110   : > { %v411_v31 = vpop.xlane.xlu0 %410 }
 0x111   : > { %v417_v32 = vpop.xlane.xlu1 %416  ;;  %v425_v33 = vsub.f32 %v361_v14, %v411_v31 }
 0x112   : > { %v427_v34 = vsub.f32 %v391_v15, %v417_v32  ;;  %v402_v35 = vpop.xlane.xlu2 %401 }
 0x113   : > { %v437_v36 = vmul.f32 1.442695, %v425_v33  ;;  %v422_v38 = vsub.f32 %v303_v18, %v402_v35 }
 0x114   : > { %v441_v37 = vmul.f32 1.442695, %v427_v34 }
 0x115   : > { %v964_v39 = vpop.eup %844  ;;  %846 = vpow2.f32 %v437_v36  ;;  %v431_v41 = vmul.f32 1.442695, %v422_v38 }
 0x116   : > { %848 = vpow2.f32 %v441_v37  ;;  %v445_v40 = vsel %vm396_vm1, %v964_v39, 0.0 }
 0x117   : > { %446 = vadd.xlane.f32.xlu0 %v445_v40  ;;  %850 = vpow2.f32 %v431_v41 }
 0x118   : > { %v414_v42 = vpop.xlane.xlu0 %413 }
 0x119   : > { %v420_v43 = vpop.xlane.xlu1 %419  ;;  %v426_v44 = vsub.f32 %v363_v21, %v414_v42 }
 0x11a   : > { %v428_v45 = vsub.f32 %v393_v22, %v420_v43 }
 0x11b   : > { %v847_v46 = vpop.eup %846  ;;  %v439_v47 = vmul.f32 1.442695, %v426_v44 }
 0x11c   : > { %v849_v48 = vpop.eup %848  ;;  %v443_v49 = vmul.f32 1.442695, %v428_v45  ;;  %v457_v50 = vsel %vm396_vm1, %v847_v46, 0.0 }
 0x11d   : > { %852 = vpow2.f32 %v439_v47  ;;  %v463_v51 = vsel %vm396_vm1, %v849_v48, 0.0  ;;  %458 = vadd.xlane.f32.xlu2 %v457_v50  ;;  %v851_v55 = vpop.eup %850 }
 0x11e   : > { %854 = vpow2.f32 %v443_v49  ;;  %464 = vadd.xlane.f32.xlu1 %v463_v51  ;;  %v448_v63 = vsel %vm396_vm1, %v851_v55, 0.0 }
 0x120   : > { %v405_v52 = vpop.xlane.xlu0 %404 }
 0x121   : > { %v423_v53 = vsub.f32 %v331_v20, %v405_v52  ;;  %v408_v54 = vpop.xlane.xlu1 %407 }
 0x122   : > { %v424_v56 = vsub.f32 %v333_v25, %v408_v54 }
 0x123   : > { %v853_v57 = vpop.eup %852  ;;  %v433_v58 = vmul.f32 1.442695, %v423_v53 }
 0x124   : > { %v855_v59 = vpop.eup %854  ;;  %v435_v60 = vmul.f32 1.442695, %v424_v56  ;;  %v460_v61 = vsel %vm396_vm1, %v853_v57, 0.0 }
 0x125   : > { %856 = vpow2.f32 %v433_v58  ;;  %461 = vadd.xlane.f32.xlu0 %v460_v61  ;;  %v466_v62 = vsel %vm396_vm1, %v855_v59, 0.0 }
 0x126   : > { %858 = vpow2.f32 %v435_v60  ;;  %467 = vadd.xlane.f32.xlu2 %v466_v62  ;;  %449 = vadd.xlane.f32.xlu1 %v448_v63 }
 0x12b   : > { %v973_v0 = vpop.eup %856 }
 0x12c   : > { %v859_v1 = vpop.eup %858  ;;  %v451_v2 = vsel %vm396_vm1, %v973_v0, 0.0 }
 0x12d   : > { %v454_v3 = vsel %vm396_vm1, %v859_v1, 0.0 }
 0x12e   : > { %455 = vadd.xlane.f32.xlu0 %v454_v3  ;;  %452 = vadd.xlane.f32.xlu2 %v451_v2 }
 0x18a   : > { %v447_v8 = vpop.xlane.xlu0 %446 }
 0x190   : > { %v459_v9 = vpop.xlane.xlu2 %458 }
 0x191   : > { %v465_v10 = vpop.xlane.xlu1 %464  ;;  %860 = vrcp.f32 %v459_v9 }
 0x192   : > { %862 = vrcp.f32 %v447_v8 }
 0x193   : > { %864 = vrcp.f32 %v465_v10 }
 0x197   : > { %v861_v12 = vpop.eup %860 }
 0x198   : > { %v462_v11 = vpop.xlane.xlu0 %461  ;;  %v863_v15 = vpop.eup %862  ;;  %v481_v17 = vmul.f32 %v861_v12, %v847_v46 }
 0x199   : > { %866 = vrcp.f32 %v462_v11  ;;  %v450_v13 = vpop.xlane.xlu1 %449  ;;  %v468_v14 = vpop.xlane.xlu2 %467  ;;  %v477_v18 = vmul.f32 %v863_v15, %v964_v39 }
 0x19a   : > { %868 = vrcp.f32 %v450_v13  ;;  %v865_v16 = vpop.eup %864  ;;  %v489_v22 = vpack.c.bf16 %v481_v17, %v481_v17 }
 0x19b   : > { %870 = vrcp.f32 %v468_v14  ;;  %v483_v19 = vmul.f32 %v865_v16, %v849_v48  ;;  %v485_v25 = vpack.c.bf16 %v477_v18, %v477_v18 }
 0x19c   : > { %v551_v33 = vunpack.c.l.b16 %v489_v22 }
 0x19d   : > { %v491_v29 = vpack.c.bf16 %v483_v19, %v483_v19  ;;  %v495_v36 = vunpack.c.l.b16 %v485_v25 }
 0x19f   : > { %v867_v20 = vpop.eup %866  ;;  %v579_v38 = vunpack.c.l.b16 %v491_v29 }
 0x1a0   : > { %v869_v21 = vpop.eup %868  ;;  %v482_v23 = vmul.f32 %v867_v20, %v853_v57 }
 0x1a1   : > { %v871_v24 = vpop.eup %870  ;;  %v478_v26 = vmul.f32 %v869_v21, %v851_v55  ;;  %v456_v27 = vpop.xlane.xlu0 %455 }
 0x1a2   : > { %v453_v28 = vpop.xlane.xlu2 %452  ;;  %v490_v30 = vpack.c.bf16 %v482_v23, %v482_v23  ;;  %v484_v31 = vmul.f32 %v871_v24, %v855_v59  ;;  %872 = vrcp.f32 %v456_v27 }
 0x1a3   : > { %v486_v32 = vpack.c.bf16 %v478_v26, %v478_v26  ;;  %874 = vrcp.f32 %v453_v28 }
 0x1a4   : > { %v552_v34 = vunpack.c.l.b16 %v490_v30  ;;  %v492_v35 = vpack.c.bf16 %v484_v31, %v484_v31 }
 0x1a5   : > { %v496_v37 = vunpack.c.l.b16 %v486_v32 }
 0x1a6   : > { %v580_v39 = vunpack.c.l.b16 %v492_v35  ;;  %v553_v40 = vpack.c.b16 %v552_v34, %v551_v33 }
 0x1a7   : > { %v497_v41 = vpack.c.b16 %v496_v37, %v495_v36 }
 0x1a8   : > { %v873_v42 = vpop.eup %872  ;;  %796 = vmatmul.msk.bf16.vlgmr.msrb.gmra.mxu2 %vm396_vm1, %v553_v40  ;;  %v581_v43 = vpack.c.b16 %v580_v39, %v579_v38 }
 0x1a9   : > { %v875_v44 = vpop.eup %874  ;;  %v480_v45 = vmul.f32 %v873_v42, %v859_v1  ;;  %786 = vmatmul.msk.bf16.vlgmr.msrb.gmra.mxu0 %vm396_vm1, %v497_v41 }
 0x1aa   : > { %v479_v46 = vmul.f32 %v875_v44, %v973_v0  ;;  %801 = vmatmul.msk.bf16.vlgmr.msrb.gmra.mxu3 %vm396_vm1, %v581_v43 }
 0x1ab   : > { %v488_v47 = vpack.c.bf16 %v480_v45, %v480_v45 }
 0x1ac   : > { %v487_v48 = vpack.c.bf16 %v479_v46, %v479_v46 }
 0x1ad   : > { %v524_v49 = vunpack.c.l.b16 %v488_v47 }
 0x1ae   : > { %v523_v50 = vunpack.c.l.b16 %v487_v48 }
 0x1b0   : > { %v525_v51 = vpack.c.b16 %v524_v49, %v523_v50 }
 0x1b2   : > { %791 = vmatmul.msk.bf16.vlgmr.msrb.gmra.mxu1 %vm396_vm1, %v525_v51 }
 0x226   : > { %v516_v52 = vpop.f32.mrf.mxu0 }
 0x227   : > { %v605_v53 = vpack.c.bf16 %v516_v52, %v516_v52 }
 0x229   : > { %614 = vst.msk [vmem:[%s248_s28] sm:$0xf] %vm613_vm2, %v605_v53 }
 0x22b   : > { %v572_v54 = vpop.f32.mrf.mxu2 }
 0x22c   : > { %v609_v55 = vpack.c.bf16 %v572_v54, %v572_v54 }
 0x22d   : > { %v600_v56 = vpop.f32.mrf.mxu3 }
 0x22e   : > { %618 = vst.msk [vmem:[%s248_s28 + $0x10] sm:$0xf] %vm613_vm2, %v609_v55  ;;  %v611_v57 = vpack.c.bf16 %v600_v56, %v600_v56  ;;  %v518_v58 = vpop.f32.mrf.mxu0 }
 0x22f   : > { %v606_v59 = vpack.c.bf16 %v518_v58, %v518_v58  ;;  %v544_v60 = vpop.f32.mrf.mxu1 }
 0x230   : > { %620 = vst.msk [vmem:[%s248_s28 + $0x18] sm:$0xf] %vm613_vm2, %v611_v57  ;;  %v607_v61 = vpack.c.bf16 %v544_v60, %v544_v60 }
 0x231   : > { %615 = vst.msk [vmem:[%s248_s28 + $0x4] sm:$0xf] %vm613_vm2, %v606_v59 }
 0x232   : > { %616 = vst.msk [vmem:[%s248_s28 + $0x8] sm:$0xf] %vm613_vm2, %v607_v61 }
 0x233   : > { %v574_v62 = vpop.f32.mrf.mxu2 }
 0x234   : > { %v610_v63 = vpack.c.bf16 %v574_v62, %v574_v62 }
 0x235   : > { %v602_v0 = vpop.f32.mrf.mxu3 }
 0x236   : > { %619 = vst.msk [vmem:[%s248_s28 + $0x14] sm:$0xf] %vm613_vm2, %v610_v63  ;;  %v612_v1 = vpack.c.bf16 %v602_v0, %v602_v0 }
 0x237   : > { %v546_v2 = vpop.f32.mrf.mxu1 }
 0x238   : > { %621 = vst.msk [vmem:[%s248_s28 + $0x1c] sm:$0xf] %vm613_vm2, %v612_v1  ;;  %v608_v3 = vpack.c.bf16 %v546_v2, %v546_v2 }
 0x23a   : > { %617 = vst.msk [vmem:[%s248_s28 + $0xc] sm:$0xf] %vm613_vm2, %v608_v3 }
 0x23b PF: > { %s13_s14 = sadd.s32 1, %s898_s14   ;;  %s1013_s12 = smov %s894_s13 }
 0x23c   : > { %p10_p5 = scmp.ge.s32.totalorder %s13_s14, 4   ;;  %s1014_s13 = smov %s1016_s15 }
 0x23e   :  { %12 = sbr.rel (!%p10_p5) target bundleno = 2 (0x2), region = 68 }

// kernel: siglip_vision_forward.15
= control target key start
LH: loop header
LB: loop body
LE: loop exit
PB: predicated region body
PF: predicated region fallthrough
CT: control target
= control target key end

     0   :  { %8 = vsyncpa [#allocation3], 0  ;;  %s664_s0 = inlined_call_operand.vmem [shape: bf16[2,16,32], index: 0, kind: input, shape index: {}]   ;;  %s665_s1 = inlined_call_operand.vmem [shape: f32[1,32], index: 1, kind: input, shape index: {}]   ;;  %s666_s2 = inlined_call_operand.vmem [shape: f32[1,32], index: 2, kind: input, shape index: {}]   ;;  %s667_s3 = inlined_call_operand.hbm [shape: f32[2,16,32], index: 3, kind: output, shape index: {}]  }
   0x1   :  { %10 = vsyncpa [#allocation3 + $0x1], 0  ;;  %s555_s12 = smov 0   ;;  %s557_s13 = smov 0  }
   0x2   :  { %s559_s14 = smov 0   ;;  %s561_s15 = smov 0  }
   0x3   :  { %s563_s16 = smov 0   ;;  %s565_s17 = smov 0  }
   0x4 LB: > { %s367_s18 = sadd.s32 4294967295, %s530_s17   ;;  %s368_s19 = sadd.s32 4294967294, %s530_s17   ;;  %s530_s17 = sphi %s565_s17, %s16_s17   ;;  %s526_s16 = sphi %s563_s16, %s674_s16   ;;  %s522_s15 = sphi %s561_s15, %s673_s15   ;;  %s518_s14 = sphi %s559_s14, %s672_s14   ;;  %s514_s13 = sphi %s557_s13, %s671_s13   ;;  %s510_s12 = sphi %s555_s12, %s670_s12  }
   0x5   : > { %s28_s20 = sadd.s32 1, %s526_s16  ;;  %s107_s21 = sadd.s32 1, %s518_s14 }
   0x6   : > { %p30_p0 = scmp.ge.s32.totalorder %s28_s20, 2  ;;  %p117_p1 = scmp.ne.s32.totalorder %s518_s14, %s514_s13 }
   0x7   : > { %p118_p2 = scmp.eq.s32.totalorder %s367_s18, 1  ;;  %p123_p3 = scmp.ne.s32.totalorder %s514_s13, %s510_s12 }
   0x8   : > { %s676_s20 = smov (%p30_p0, %s28_s20), 0  ;;  %p124_p5 = scmp.eq.s32.totalorder %s368_s19, 1 }
   0x9   : > { %p595_p4 = por %p118_p2, %p117_p1  ;;  %s102_s23 = ssub.s32 %s526_s16, %s676_s20 }
   0xa   : > { %p371_p6 = scmp.ge.s32.totalorder %s530_s17, 1  ;;  %p105_p7 = scmp.eq.s32.totalorder %s102_s23, 0 }
   0xb   : > { %p602_p8 = por %p124_p5, %p123_p3  ;;  %p161_p9 = scmp.lt.s32.totalorder %s530_s17, 3 }
   0xc   : > { %s608_s25 = scalar_select %p105_p7, %s518_s14, %s107_s21  }
   0xd   : > { %p162_p10 = pnand %p371_p6, %p161_p9 }
   0xe   : > { %p190_p11 = scmp.lt.s32.totalorder (!%p162_p10), %s522_s15, 1  ;;  %s186_s4 = sand.u32 (!%p162_p10), 1, %s514_s13  }
   0xf   : > { %165 = sbr.rel (%p162_p10) target bundleno = 307 (0x133), region = 32  ;;  %s372_s9 = sshll.u32 (!%p162_p10), %s186_s4, 4 }
  0x10   : > { %s381_s10 = sshll.u32 (!%p162_p10), %s522_s15, 4  ;;  %s188_s21 = scalar_lea.vmem (!%p162_p10), [#allocation2], %s372_s9 }
  0x11   : > { %s284_s19 = scalar_lea.hbm (!%p162_p10), %s667_s3, %s381_s10  ;;  %s285_s23 = sshll.u32 (!%p162_p10), %s188_s21, 4  ;;  %s286_s23 = int_to_ptr.vmem [resolvable:$true] %s285_s23 }
  0x12   : > { %s472_s5 = scalar_lea.hbm (!%p162_p10), %s667_s3, 32 }
  0x14   : > { %s191_s26 = scalar_select %p190_p11, %s522_s15, 1  ;;  %vm206_vm0 = vcmask 261120   ;;  %v532_v5 = vmov 32.0   ;;  %v444_v36 = vld [vmem:[%s665_s1] ss:$0 sm:$0xff] }
  0x15   : > { %446 = vrcp.f32 %v532_v5  ;;  %v445_v39 = vld [vmem:[%s666_s2] ss:$0 sm:$0xff]  ;;  %s271_s15 = scalar_lea.sflag [#allocation3], %s186_s4 }
  0x16   : > { %s380_s27 = sshll.u32 %s191_s26, 3  ;;  %s287_s26 = sshll.u32 %s284_s19, 4  ;;  %s288_s26 = int_to_ptr.hbm [resolvable:$true] %s287_s26 }
  0x17   : > { %s197_s30 = scalar_lea.vmem %s664_s0, %s380_s27  ;;  %s466_s27 = sshra.s32 %s288_s26, 4  ;;  %s467_s27 = int_to_ptr.hbm [resolvable:$true] %s466_s27 }
  0x18   : > { %v383_v0 = vld [vmem:[%s197_s30] sm:$0xff]   ;;  %s468_s28 = scalar_lea.hbm %s467_s27, 16  ;;  %p473_p1 = scmp.lt.s32.totalorder %s467_s27, %s667_s3 }
  0x19   : > { %v384_v1 = vunpack.c.l.bf16 %v383_v0  ;;  %v385_v3 = vunpack.c.h.bf16 %v383_v0  ;;  %p469_p12 = scmp.ne.s32.totalorder %s467_s27, %s468_s28  ;;  %p474_p2 = scmp.lt.s32.totalorder %s472_s5, %s468_s28 }
  0x1b   : > { %v207_v2 = vsel %vm206_vm0, %v384_v1, 0.0  ;;  %v210_v4 = vsel %vm206_vm0, %v385_v3, 0.0  ;;  %v447_v6 = vpop.eup %446  ;;  %p470_p13 = pnand %p469_p12, %p595_p4  ;;  %p475_p3 = por %p474_p2, %p473_p1 }
  0x1c   : > { %208 = vadd.xlane.f32.xlu0 %v207_v2  ;;  %v214_v7 = vmul.f32 32.0, %v447_v6  ;;  %vm218_vm1 = vweird.f32 %v447_v6 }
  0x1d   : > { %p471_p0 = pneg %p470_p13 }
  0x1e   : > { %v215_v8 = vsub.f32 1.0, %v214_v7 }
  0x1f   : > { %p476_p5 = pnand %p475_p3, %p471_p0 }
  0x20   : > { %v216_v9 = vmul.f32 %v447_v6, %v215_v8 }
  0x22   : > { %v217_v10 = vadd.f32 %v447_v6, %v216_v9 }
  0x24   : > { %211 = vadd.xlane.f32.xlu0 %v210_v4  ;;  %v219_v11 = vsel %vm218_vm1, %v447_v6, %v217_v10 }
  0x8f   : > { %v209_v12 = vpop.xlane.xlu0 %208 }
  0x90   : > { %v220_v13 = vmul.f32 %v219_v11, %v209_v12 }
  0x92   : > { %v222_v14 = vsub.f32 %v384_v1, %v220_v13 }
  0x94   : > { %v224_v15 = vmul.f32 %v222_v14, %v222_v14 }
  0x96   : > { %v226_v16 = vsel %vm206_vm0, %v224_v15, 0.0 }
  0x97   : > { %227 = vadd.xlane.f32.xlu1 %v226_v16  ;;  %v212_v17 = vpop.xlane.xlu0 %211 }
  0x98   : > { %v221_v18 = vmul.f32 %v219_v11, %v212_v17 }
  0x9a   : > { %v223_v19 = vsub.f32 %v385_v3, %v221_v18 }
  0x9c   : > { %v225_v20 = vmul.f32 %v223_v19, %v223_v19 }
  0x9e   : > { %v229_v21 = vsel %vm206_vm0, %v225_v20, 0.0 }
  0x9f   : > { %230 = vadd.xlane.f32.xlu1 %v229_v21 }
 0x10a   : > { %v228_v22 = vpop.xlane.xlu1 %227 }
 0x10b   : > { %v232_v23 = vmul.f32 %v228_v22, %v219_v11 }
 0x10d   : > { %v234_v24 = vadd.f32 1e-06, %v232_v23 }
 0x10f   : > { %448 = vrsqrt.f32 %v234_v24  ;;  %vm242_vm3 = vweird.f32 %v234_v24 }
 0x112   : > { %v231_v25 = vpop.xlane.xlu1 %230 }
 0x113   : > { %v233_v26 = vmul.f32 %v231_v25, %v219_v11 }
 0x115   : > { %v449_v27 = vpop.eup %448  ;;  %v235_v28 = vadd.f32 1e-06, %v233_v26 }
 0x116   : > { %v237_v29 = vmul.f32 %v449_v27, %v234_v24  ;;  %vm243_vm2 = vweird.f32 %v449_v27 }
 0x117   : > { %450 = vrsqrt.f32 %v235_v28  ;;  %vm244_vm4 = vmor %vm242_vm3, %vm243_vm2  ;;  %vm252_vm6 = vweird.f32 %v235_v28 }
 0x118   : > { %v238_v30 = vmul.f32 %v449_v27, %v237_v29 }
 0x11a   : > { %v239_v31 = vmul.f32 0.5, %v238_v30 }
 0x11c   : > { %v240_v32 = vsub.f32 1.5, %v239_v31 }
 0x11d   : > { %v451_v33 = vpop.eup %450 }
 0x11e   : > { %v241_v34 = vmul.f32 %v449_v27, %v240_v32  ;;  %v247_v35 = vmul.f32 %v451_v33, %v235_v28  ;;  %vm253_vm5 = vweird.f32 %v451_v33 }
 0x11f   : > { %vm254_vm7 = vmor %vm252_vm6, %vm253_vm5 }
 0x120   : > { %v245_v37 = vsel %vm244_vm4, %v449_v27, %v241_v34  ;;  %v248_v38 = vmul.f32 %v451_v33, %v247_v35 }
 0x121   : > { %v256_v40 = vmul.f32 %v245_v37, %v222_v14 }
 0x122   : > { %v249_v41 = vmul.f32 0.5, %v248_v38 }
 0x123   : > { %v261_v42 = vmul.f32 %v444_v36, %v256_v40 }
 0x124   : > { %v250_v43 = vsub.f32 1.5, %v249_v41 }
 0x125   : > { %v266_v44 = vadd.f32 %v445_v39, %v261_v42 }
 0x126   : > { %v251_v45 = vmul.f32 %v451_v33, %v250_v43 }
 0x127   : > { %268 = vst.msk [vmem:[%s188_s21] sm:$0xff] %vm206_vm0, %v266_v44 }
 0x128   : > { %v255_v46 = vsel %vm254_vm7, %v451_v33, %v251_v45 }
 0x129   : > { %v257_v47 = vmul.f32 %v255_v46, %v223_v19 }
 0x12b   : > { %v262_v48 = vmul.f32 %v444_v36, %v257_v47 }
 0x12d   : > { %v267_v49 = vadd.f32 %v445_v39, %v262_v48 }
 0x12f   : > { %269 = vst.msk [vmem:[%s188_s21 + $0x8] sm:$0xff] %vm206_vm0, %v267_v49 }
 0x130   : > { %479 = shalt.err (!%p476_p5)
}
 0x131   : > { %s533_s4 = smov 128   ;;  %s534_s8 = smov 8  }
 0x132   : > { %386 = dma.vmem_to_hbm [thread:$0]  (%p595_p4), %s286_s23, 256, %s288_s26, %s271_s15, %s533_s4, %s533_s4, %s534_s8  }
 0x133 PF: > { %p392_p6 = scmp.ge.s32.totalorder %s530_s17, 2  ;;  %s302_s9 = sand.u32 1, %s510_s12  }
 0x134   : > { %s303_s10 = scalar_lea.sflag [#allocation3], %s302_s9 }
 0x135   : > { %p389_p7 = pnand %p392_p6, %p602_p8 }
 0x137   : > { %p390_p9 = pneg %p389_p7 }
 0x139   : > { %505 = dma.done.wait (%p390_p9), %s303_s10, 256  }
 0x13a   : > { %507 = vsyncadd (%p390_p9), %s303_s10, 4294967040  ;;  %s16_s17 = sadd.s32 1, %s530_s17   ;;  %s670_s12 = smov %s514_s13 }
 0x13b   : > { %p13_p10 = scmp.ge.s32.totalorder %s16_s17, 4   ;;  %s671_s13 = smov %s518_s14 }
 0x13c   : > { %s672_s14 = smov %s608_s25  ;;  %s673_s15 = smov %s526_s16 }
 0x13d   : > { %s674_s16 = smov %s676_s20  ;;  %15 = sbr.rel (!%p13_p10) target bundleno = 4 (0x4), region = 67 }
 0x142   :  { %309 = vsyncpa [#allocation3], 1 }
 0x143   :  { %311 = vsyncpa [#allocation3 + $0x1], 1 }

// kernel: siglip_vision_forward.11
= control target key start
LH: loop header
LB: loop body
LE: loop exit
PB: predicated region body
PF: predicated region fallthrough
CT: control target
= control target key end

     0   :  { %s961_s13 = smov 0   ;;  %s963_s14 = smov 0   ;;  %s1057_s0 = inlined_call_operand.vmem [shape: bf16[2,16,32], index: 0, kind: input, shape index: {}]   ;;  %s1058_s1 = inlined_call_operand.vmem [shape: bf16[2,16,32], index: 1, kind: input, shape index: {}, may-alias: {1,10}]   ;;  %s1059_s2 = inlined_call_operand.vmem [shape: bf16[32,32], index: 2, kind: input, shape index: {}]   ;;  %s1060_s3 = inlined_call_operand.vmem [shape: f32[1,32], index: 3, kind: input, shape index: {}]   ;;  %s1061_s4 = inlined_call_operand.vmem [shape: f32[1,32], index: 4, kind: input, shape index: {}]   ;;  %s1062_s5 = inlined_call_operand.vmem [shape: f32[1,32], index: 5, kind: input, shape index: {}]   ;;  %s1063_s6 = inlined_call_operand.vmem [shape: bf16[32,64], index: 6, kind: input, shape index: {}]   ;;  %s1064_s7 = inlined_call_operand.vmem [shape: f32[1,64], index: 7, kind: input, shape index: {}]   ;;  %s1065_s8 = inlined_call_operand.vmem [shape: bf16[64,32], index: 8, kind: input, shape index: {}]   ;;  %s1066_s9 = inlined_call_operand.vmem [shape: f32[1,32], index: 9, kind: input, shape index: {}]   ;;  %s1067_s10 = inlined_call_operand.vmem [shape: bf16[2,16,32], index: 10, kind: output, shape index: {}, may-alias: {1,10}]  }
   0x1   :  { %s965_s15 = smov 0  }
   0x2 LB: > { %s32_s16 = sadd.s32 1, %s899_s14  ;;  %p777_p0 = scmp.ge.s32.totalorder %s903_s15, 1  ;;  %s903_s15 = sphi %s965_s15, %s20_s15   ;;  %s899_s14 = sphi %s963_s14, %s1069_s14   ;;  %s895_s13 = sphi %s961_s13, %s1068_s13  }
   0x3   : > { %p34_p1 = scmp.ge.s32.totalorder %s32_s16, 2  ;;  %p350_p2 = scmp.lt.s32.totalorder %s903_s15, 3 }
   0x5   : > { %s1071_s16 = smov (%p34_p1, %s32_s16), 0  ;;  %p351_p3 = pnand %p777_p0, %p350_p2 }
   0x6   : > { %p406_p4 = scmp.lt.s32.totalorder (!%p351_p3), %s895_s13, 1 }
   0x7   : > { %354 = sbr.rel (%p351_p3) target bundleno = 734 (0x2de), region = 60 }
   0xc   : > { %v830_v0 = vld [vmem:[%s1059_s2 + $0x8] sm:$0xff]  ;;  %v829_v1 = vld [vmem:[%s1059_s2] sm:$0xff]  ;;  %s1073_s13 = smov (!%p406_p4, %s895_s13), 1  ;;  %vm463_vm0 = vcmask 261120   ;;  %v905_v15 = vmov 32.0   ;;  %v836_v63 = vld [vmem:[%s1065_s8 + $0x18] sm:$0xff] }
   0xd   : > { %473 = vmatpush.bf16.msra.mxu0 %v830_v0  ;;  %s985_s21 = sshll.u32 %s1073_s13, 3  ;;  %v866_v4 = vld [vmem:[%s1060_s3] ss:$0 sm:$0xff]  ;;  %871 = vrcp.f32 %v905_v15  ;;  %v832_v32 = vld [vmem:[%s1063_s6 + $0x8] sm:$0xff]  ;;  %651 = vmatpush.bf16.msra.mxu2 %v836_v63  ;;  %v835_v0 = vld [vmem:[%s1065_s8 + $0x10] sm:$0xff]  ;;  %vm643_vm8 = vcmask 523264  }
   0xe   : > { %s413_s24 = scalar_lea.vmem %s1057_s0, %s985_s21  ;;  %s423_s27 = scalar_lea.vmem %s1058_s1, %s985_s21  ;;  %580 = vmatpush.bf16.msra.mxu1 %v832_v32  ;;  %v831_v34 = vld [vmem:[%s1063_s6] sm:$0xff]  ;;  %vm665_vm9 = vcmask 257024  }
   0xf   : > { %v828_v2 = vld [vmem:[%s413_s24] sm:$0xff]  ;;  %s433_s19 = scalar_lea.vmem %s1067_s10, %s985_s21 }
  0x10   : > { %v838_v3 = vld [vmem:[%s423_s27] sm:$0xff]  }
  0x11   : > { %474 = vmatpush.bf16.msra.mxu0 %v829_v1  ;;  %v839_v5 = vunpack.c.l.bf16 %v838_v3  ;;  %v840_v10 = vunpack.c.h.bf16 %v838_v3  ;;  %v867_v53 = vld [vmem:[%s1061_s4] ss:$0 sm:$0xff]  ;;  %652 = vmatpush.bf16.msra.mxu2 %v835_v0  ;;  %v834_v1 = vld [vmem:[%s1065_s8 + $0x8] sm:$0xff] }
  0x12   : > { %581 = vmatpush.bf16.msra.mxu1 %v831_v34  ;;  %v868_v58 = vld [vmem:[%s1062_s5] ss:$0 sm:$0xff] }
  0x13   : > { %v872_v16 = vpop.eup %871  ;;  %v869_v3 = vld [vmem:[%s1064_s7] ss:$0 sm:$0xff] }
  0x14   : > { %796 = vmatmul.msk.bf16.vlgmr.msra.gmra.mxu0 %vm463_vm0, %v828_v2  ;;  %v496_v17 = vmul.f32 32.0, %v872_v16  ;;  %vm500_vm1 = vweird.f32 %v872_v16  ;;  %v833_v2 = vld [vmem:[%s1065_s8] sm:$0xff] }
  0x15   : > { %653 = vmatpush.bf16.msra.mxu2 %v834_v1 }
  0x16   : > { %v497_v18 = vsub.f32 1.0, %v496_v17 }
  0x18   : > { %v498_v19 = vmul.f32 %v872_v16, %v497_v18 }
  0x19   : > { %654 = vmatpush.bf16.msra.mxu2 %v833_v2 }
  0x1a   : > { %v499_v20 = vadd.f32 %v872_v16, %v498_v19 }
  0x1c   : > { %v501_v21 = vsel %vm500_vm1, %v872_v16, %v499_v20 }
  0x91   : > { %v476_v6 = vpop.f32.mrf.mxu0 }
  0x92   : > { %v477_v7 = vadd.f32 %v866_v4, %v476_v6 }
  0x94   : > { %v999_v8 = vadd.f32 %v839_v5, %v477_v7 }
  0x96   : > { %v489_v9 = vsel %vm463_vm0, %v999_v8, 0.0 }
  0x97   : > { %490 = vadd.xlane.f32.xlu0 %v489_v9 }
  0x99   : > { %v478_v11 = vpop.f32.mrf.mxu0 }
  0x9a   : > { %v479_v12 = vadd.f32 %v866_v4, %v478_v11 }
  0x9c   : > { %v1003_v13 = vadd.f32 %v840_v10, %v479_v12 }
  0x9e   : > { %v492_v14 = vsel %vm463_vm0, %v1003_v13, 0.0 }
  0x9f   : > { %493 = vadd.xlane.f32.xlu0 %v492_v14 }
 0x10a   : > { %v491_v22 = vpop.xlane.xlu0 %490 }
 0x10b   : > { %v502_v23 = vmul.f32 %v501_v21, %v491_v22 }
 0x10d   : > { %v504_v24 = vsub.f32 %v999_v8, %v502_v23 }
 0x10f   : > { %v506_v25 = vmul.f32 %v504_v24, %v504_v24 }
 0x111   : > { %v508_v26 = vsel %vm463_vm0, %v506_v25, 0.0 }
 0x112   : > { %509 = vadd.xlane.f32.xlu1 %v508_v26  ;;  %v494_v27 = vpop.xlane.xlu0 %493 }
 0x113   : > { %v503_v28 = vmul.f32 %v501_v21, %v494_v27 }
 0x115   : > { %v505_v29 = vsub.f32 %v1003_v13, %v503_v28 }
 0x117   : > { %v507_v30 = vmul.f32 %v505_v29, %v505_v29 }
 0x119   : > { %v511_v31 = vsel %vm463_vm0, %v507_v30, 0.0 }
 0x11a   : > { %512 = vadd.xlane.f32.xlu1 %v511_v31 }
 0x185   : > { %v510_v33 = vpop.xlane.xlu1 %509 }
 0x186   : > { %v514_v35 = vmul.f32 %v510_v33, %v501_v21 }
 0x188   : > { %v516_v36 = vadd.f32 1e-06, %v514_v35 }
 0x18a   : > { %873 = vrsqrt.f32 %v516_v36  ;;  %vm524_vm3 = vweird.f32 %v516_v36 }
 0x18d   : > { %v513_v37 = vpop.xlane.xlu1 %512 }
 0x18e   : > { %v515_v38 = vmul.f32 %v513_v37, %v501_v21 }
 0x190   : > { %v874_v39 = vpop.eup %873  ;;  %v517_v40 = vadd.f32 1e-06, %v515_v38 }
 0x191   : > { %v519_v41 = vmul.f32 %v874_v39, %v516_v36  ;;  %vm525_vm2 = vweird.f32 %v874_v39 }
 0x192   : > { %875 = vrsqrt.f32 %v517_v40  ;;  %vm526_vm4 = vmor %vm524_vm3, %vm525_vm2  ;;  %vm534_vm6 = vweird.f32 %v517_v40 }
 0x193   : > { %v520_v42 = vmul.f32 %v874_v39, %v519_v41 }
 0x195   : > { %v521_v43 = vmul.f32 0.5, %v520_v42 }
 0x197   : > { %v522_v44 = vsub.f32 1.5, %v521_v43 }
 0x198   : > { %v876_v45 = vpop.eup %875 }
 0x199   : > { %v523_v46 = vmul.f32 %v874_v39, %v522_v44  ;;  %v529_v47 = vmul.f32 %v876_v45, %v517_v40  ;;  %vm535_vm5 = vweird.f32 %v876_v45 }
 0x19a   : > { %vm536_vm7 = vmor %vm534_vm6, %vm535_vm5 }
 0x19b   : > { %v530_v48 = vmul.f32 %v876_v45, %v529_v47  ;;  %v527_v49 = vsel %vm526_vm4, %v874_v39, %v523_v46 }
 0x19c   : > { %v538_v52 = vmul.f32 %v527_v49, %v504_v24 }
 0x19d   : > { %v531_v50 = vmul.f32 0.5, %v530_v48 }
 0x19e   : > { %v543_v57 = vmul.f32 %v867_v53, %v538_v52 }
 0x19f   : > { %v532_v51 = vsub.f32 1.5, %v531_v50 }
 0x1a0   : > { %v548_v60 = vadd.f32 %v868_v58, %v543_v57 }
 0x1a1   : > { %v533_v54 = vmul.f32 %v876_v45, %v532_v51 }
 0x1a3   : > { %v537_v55 = vsel %vm536_vm7, %v876_v45, %v533_v54 }
 0x1a4   : > { %v539_v56 = vmul.f32 %v537_v55, %v505_v29  ;;  %v870_v29 = vld [vmem:[%s1066_s9] ss:$0 sm:$0xff] }
 0x1a6   : > { %v544_v59 = vmul.f32 %v867_v53, %v539_v56 }
 0x1a8   : > { %v549_v61 = vadd.f32 %v868_v58, %v544_v59 }
 0x1aa   : > { %v550_v62 = vpack.c.bf16 %v549_v61, %v548_v60 }
 0x1ac   : > { %805 = vmatmul.msk.bf16.vlgmr.msra.gmra.mxu1 %vm463_vm0, %v550_v62 }
 0x229   : > { %v583_v4 = vpop.f32.mrf.mxu1 }
 0x22a   : > { %v584_v5 = vadd.f32 %v869_v3, %v583_v4 }
 0x22c   : > { %v590_v6 = vmul.f32 0.044715, %v584_v5  ;;  %v588_v23 = vmul.f32 0.5, %v584_v5 }
 0x22e   : > { %v592_v7 = vmul.f32 %v590_v6, %v584_v5 }
 0x230   : > { %v594_v9 = vmul.f32 %v592_v7, %v584_v5 }
 0x231   : > { %v585_v10 = vpop.f32.mrf.mxu1 }
 0x232   : > { %v586_v11 = vadd.f32 %v869_v3, %v585_v10  ;;  %v596_v12 = vadd.f32 %v594_v9, %v584_v5 }
 0x234   : > { %v591_v14 = vmul.f32 0.044715, %v586_v11  ;;  %v598_v16 = vmul.f32 0.7978846, %v596_v12  ;;  %v589_v24 = vmul.f32 0.5, %v586_v11 }
 0x236   : > { %v593_v15 = vmul.f32 %v591_v14, %v586_v11  ;;  %877 = vtanh.f32 %v598_v16 }
 0x238   : > { %v595_v17 = vmul.f32 %v593_v15, %v586_v11 }
 0x23a   : > { %v597_v18 = vadd.f32 %v595_v17, %v586_v11 }
 0x23c   : > { %v599_v19 = vmul.f32 0.7978846, %v597_v18  ;;  %v878_v20 = vpop.eup %877 }
 0x23d   : > { %v602_v21 = vadd.f32 1.0, %v878_v20 }
 0x23e   : > { %879 = vtanh.f32 %v599_v19 }
 0x23f   : > { %v604_v26 = vmul.f32 %v602_v21, %v588_v23 }
 0x244   : > { %v880_v22 = vpop.eup %879 }
 0x245   : > { %v603_v25 = vadd.f32 1.0, %v880_v22 }
 0x247   : > { %v605_v27 = vmul.f32 %v603_v25, %v589_v24 }
 0x249   : > { %v606_v28 = vpack.c.bf16 %v605_v27, %v604_v26 }
 0x24b   : > { %822 = vmatmul.msk.bf16.vlgmr.msra.gmra.mxu2 %vm643_vm8, %v606_v28 }
 0x2ce   : > { %v656_v30 = vpop.f32.mrf.mxu2 }
 0x2cf   : > { %v657_v31 = vadd.f32 %v870_v29, %v656_v30 }
 0x2d1   : > { %v661_v32 = vadd.f32 %v657_v31, %v999_v8 }
 0x2d3   : > { %v663_v33 = vpack.c.bf16 %v661_v32, %v661_v32 }
 0x2d5   : > { %666 = vst.msk [vmem:[%s433_s19] sm:$0xf] %vm665_vm9, %v663_v33 }
 0x2d6   : > { %v658_v34 = vpop.f32.mrf.mxu2 }
 0x2d7   : > { %v659_v35 = vadd.f32 %v870_v29, %v658_v34 }
 0x2d9   : > { %v662_v36 = vadd.f32 %v659_v35, %v1003_v13 }
 0x2db   : > { %v664_v37 = vpack.c.bf16 %v662_v36, %v662_v36 }
 0x2dd   : > { %667 = vst.msk [vmem:[%s433_s19 + $0x4] sm:$0xf] %vm665_vm9, %v664_v37 }
 0x2de PF: > { %s20_s15 = sadd.s32 1, %s903_s15   ;;  %s1068_s13 = smov %s899_s14 }
 0x2df   : > { %p17_p5 = scmp.ge.s32.totalorder %s20_s15, 4   ;;  %s1069_s14 = smov %s1071_s16 }
 0x2e1   :  { %19 = sbr.rel (!%p17_p5) target bundleno = 2 (0x2), region = 93 }

</bundles_post_ra>
